<compile_context>
chip_gen: v5e
topology: v5e:2x2
jax: 0.10.0
libtpu: 0.0.40
codegen_flags: <defaults>
</compile_context>

<pallas_src>
import functools

import jax
import jax.numpy as jnp
from jax.experimental import pallas as pl
from jax.experimental.pallas import tpu as pltpu


_LANE = 128          # TPU lane width (last-dim tiling unit)
_PREF_TILE = 256     # preferred row / contraction tile (fits v5e/v6e/v7x budgets)
_VMEM_LIMIT = 32 * 1024 * 1024


def _round_up(n, m):
    return (n + m - 1) // m * m


def _tile_and_pad(n, pref=_PREF_TILE):
    """Return (tile, padded_size): tile is a multiple of 128 that divides padded_size."""
    p = _round_up(n, _LANE)
    if p <= pref:
        return p, p
    return pref, _round_up(n, pref)


# ---------------------------------------------------------------------------
# Kernel 1: one operator application  y = [l2norm_rows](relu(M @ x))
#   M : (R_pad, C_pad) bf16, streamed in (TM, TK) blocks
#   x : (C_pad, D_pad) f32,  streamed in (TK, D_pad) blocks (cast to bf16 in-kernel)
#   y : (R_pad, D_pad) f32,  block resident across the K axis (accumulator pattern)
# ---------------------------------------------------------------------------
def _stage_kernel(do_norm, m_ref, x_ref, o_ref, acc_ref):
    k = pl.program_id(1)

    @pl.when(k == 0)
    def _():
        acc_ref[...] = jnp.zeros_like(acc_ref)

    acc_ref[...] += jnp.dot(m_ref[...], x_ref[...].astype(jnp.bfloat16),
                            preferred_element_type=jnp.float32)

    @pl.when(k == pl.num_programs(1) - 1)
    def _():
        y = jnp.maximum(acc_ref[...], 0.0)
        if do_norm:
            # matches F.normalize(p=2, dim=1): x / max(||x||, 1e-12)
            sq = jnp.sum(y * y, axis=1, keepdims=True)
            y = y * jax.lax.rsqrt(jnp.maximum(sq, 1e-24))
        o_ref[...] = y.astype(o_ref.dtype)


def _spmm_stage(m_bf16, x_f32, *, tm, tk, do_norm):
    r_pad, c_pad = m_bf16.shape
    d_pad = x_f32.shape[1]
    grid = (r_pad // tm, c_pad // tk)
    return pl.pallas_call(
        functools.partial(_stage_kernel, do_norm),
        out_shape=jax.ShapeDtypeStruct((r_pad, d_pad), jnp.float32),
        grid_spec=pltpu.PrefetchScalarGridSpec(
            num_scalar_prefetch=0,
            grid=grid,
            in_specs=[pl.BlockSpec((tm, tk), lambda i, k: (i, k)),
                      pl.BlockSpec((tk, d_pad), lambda i, k: (k, 0))],
            out_specs=pl.BlockSpec((tm, d_pad), lambda i, k: (i, 0)),
            scratch_shapes=[pltpu.VMEM((tm, d_pad), jnp.float32)]),
        compiler_params=pltpu.CompilerParams(
            dimension_semantics=("parallel", "arbitrary"),
            vmem_limit_bytes=_VMEM_LIMIT),
    )(m_bf16, x_f32)


# ---------------------------------------------------------------------------
# Kernel 2: out = l2norm_rows(concat([x, a, b, c], axis=1))
# Writes the four d-wide slabs directly into the output block (no in-register
# concat).  Padded columns are all-zero, so the row norm equals the true norm.
# ---------------------------------------------------------------------------
def _concat_norm_kernel(x_ref, a_ref, b_ref, c_ref, o_ref):
    x = x_ref[...]
    a = a_ref[...]
    b = b_ref[...]
    c = c_ref[...]
    sq = (jnp.sum(x * x, axis=1, keepdims=True)
          + jnp.sum(a * a, axis=1, keepdims=True)
          + jnp.sum(b * b, axis=1, keepdims=True)
          + jnp.sum(c * c, axis=1, keepdims=True))
    inv = jax.lax.rsqrt(jnp.maximum(sq, 1e-24))
    d = x.shape[1]
    o_ref[:, 0:d] = x * inv
    o_ref[:, d:2 * d] = a * inv
    o_ref[:, 2 * d:3 * d] = b * inv
    o_ref[:, 3 * d:4 * d] = c * inv


def _concat_norm(x, a, b, c, *, tm):
    v_pad, d_pad = x.shape
    spec = pl.BlockSpec((tm, d_pad), lambda i: (i, 0))
    return pl.pallas_call(
        _concat_norm_kernel,
        out_shape=jax.ShapeDtypeStruct((v_pad, 4 * d_pad), jnp.float32),
        grid_spec=pltpu.PrefetchScalarGridSpec(
            num_scalar_prefetch=0,
            grid=(v_pad // tm,),
            in_specs=[spec, spec, spec, spec],
            out_specs=pl.BlockSpec((tm, 4 * d_pad), lambda i: (i, 0))),
        compiler_params=pltpu.CompilerParams(
            dimension_semantics=("parallel",),
            vmem_limit_bytes=_VMEM_LIMIT),
    )(x, a, b, c)


# ---------------------------------------------------------------------------
# Glue (plain JAX): dense padded operator matrices, built exactly as the PyTorch
# code builds its sparse COO tensors (duplicate indices sum, degree normalization),
# then cast to bf16 for the MXU.
# ---------------------------------------------------------------------------
def build_gcn_operators(edge, size_v, size_e, v_pad, e_pad, edge_weight=None):
    row0, row1, row2 = edge[0], edge[1], edge[2]
    nnz = row0.shape[0]

    # v2e : deg over hyperedges (row1), w = 1/deg, M (size_e, size_v) at (row1, row0)
    deg_e = jnp.zeros((size_e,), jnp.float32).at[row1].add(1.0)
    m_v2e = jnp.zeros((e_pad, v_pad), jnp.float32).at[row1, row0].add(1.0 / deg_e[row1])

    # e2v : deg over vertices (row0), w = 1/deg, M (size_v, size_e) at (row0, row1)
    deg_v = jnp.zeros((size_v,), jnp.float32).at[row0].add(1.0)
    m_e2v = jnp.zeros((v_pad, e_pad), jnp.float32).at[row0, row1].add(1.0 / deg_v[row0])

    # GCN : deg over row2 weighted by edge_weight, w = ew/deg[row2], M at (row2, row0)
    ew = jnp.ones((nnz,), jnp.float32) if edge_weight is None else edge_weight.astype(jnp.float32)
    deg_g = jnp.zeros((size_v,), jnp.float32).at[row2].add(ew)
    m_gcn = jnp.zeros((v_pad, v_pad), jnp.float32).at[row2, row0].add(ew / deg_g[row2])

    return (m_v2e.astype(jnp.bfloat16),
            m_e2v.astype(jnp.bfloat16),
            m_gcn.astype(jnp.bfloat16))


def gcn_forward(x, edge, size_v, size_e, edge_weight=None):
    d = x.shape[1]
    tv, v_pad = _tile_and_pad(size_v)
    te, e_pad = _tile_and_pad(size_e)
    d_pad = _round_up(d, _LANE)

    m_v2e, m_e2v, m_gcn = build_gcn_operators(edge, size_v, size_e, v_pad, e_pad, edge_weight)

    x_pad = jnp.zeros((v_pad, d_pad), jnp.float32).at[:size_v, :d].set(x.astype(jnp.float32))

    # GCN_V2E2V_layer: v2e (relu only) then e2v (relu + l2norm)
    x_e = _spmm_stage(m_v2e, x_pad, tm=te, tk=tv, do_norm=False)
    x_v2e2v = _spmm_stage(m_e2v, x_e, tm=tv, tk=te, do_norm=True)

    # Two GCN_layer applications (m_gcn streamed twice: h2 needs the full h1).
    h1 = _spmm_stage(m_gcn, x_pad, tm=tv, tk=tv, do_norm=True)
    h2 = _spmm_stage(m_gcn, h1, tm=tv, tk=tv, do_norm=True)

    # concat along features + final L2 normalize (in padded layout)
    out_pad = _concat_norm(x_pad, x_v2e2v, h1, h2, tm=tv)

    # de-pad: real rows, and the d valid columns of each padded d_pad-wide segment
    cols = [out_pad[:size_v, j * d_pad:j * d_pad + d] for j in range(4)]
    return jnp.concatenate(cols, axis=1)


@functools.partial(jax.jit, static_argnums=(4, 5, 6, 7))
def agea_forward(x1, x2, edge1, edge2, size_v1, size_e1, size_v2, size_e2,
                 edge_weight1=None, edge_weight2=None):
    y1 = gcn_forward(x1, edge1, size_v1, size_e1, edge_weight1)
    y2 = gcn_forward(x2, edge2, size_v2, size_e2, edge_weight2)
    return y1, y2


# ---------------------------------------------------------------------------
# Pure-JAX f32 reference (mirrors the PyTorch forward) for a sanity check.
# ---------------------------------------------------------------------------
def _l2norm_ref(x):
    n = jnp.sqrt(jnp.sum(x * x, axis=1, keepdims=True))
    return x / jnp.maximum(n, 1e-12)


def gcn_reference(x, edge, size_v, size_e, edge_weight=None):
    row0, row1, row2 = edge[0], edge[1], edge[2]
    deg_e = jnp.zeros((size_e,), jnp.float32).at[row1].add(1.0)
    m_v2e = jnp.zeros((size_e, size_v), jnp.float32).at[row1, row0].add(1.0 / deg_e[row1])
    deg_v = jnp.zeros((size_v,), jnp.float32).at[row0].add(1.0)
    m_e2v = jnp.zeros((size_v, size_e), jnp.float32).at[row0, row1].add(1.0 / deg_v[row0])
    ew = jnp.ones((row0.shape[0],), jnp.float32) if edge_weight is None else edge_weight
    deg_g = jnp.zeros((size_v,), jnp.float32).at[row2].add(ew)
    m_gcn = jnp.zeros((size_v, size_v), jnp.float32).at[row2, row0].add(ew / deg_g[row2])

    hp = jax.lax.Precision.HIGHEST
    x_e = jnp.maximum(jnp.dot(m_v2e, x, precision=hp), 0.0)
    xv = _l2norm_ref(jnp.maximum(jnp.dot(m_e2v, x_e, precision=hp), 0.0))
    h1 = _l2norm_ref(jnp.maximum(jnp.dot(m_gcn, x, precision=hp), 0.0))
    h2 = _l2norm_ref(jnp.maximum(jnp.dot(m_gcn, h1, precision=hp), 0.0))
    return _l2norm_ref(jnp.concatenate([x, xv, h1, h2], axis=1))


# ---------------------------------------------------------------------------
if __name__ == "__main__":
    key = jax.random.PRNGKey(0)
    k1, k2, k3, k4, k5, k6, k7, k8 = jax.random.split(key, 8)

    # graph 1
    size_v1, size_e1, feat1, ne1 = 16, 8, 32, 24
    x1 = jax.random.normal(k1, (size_v1, feat1), jnp.float32)
    edge1 = jnp.stack([
        jax.random.randint(k2, (ne1,), 0, size_v1, jnp.int32),   # vertex ids
        jax.random.randint(k3, (ne1,), 0, size_e1, jnp.int32),   # hyperedge ids
        jax.random.randint(k4, (ne1,), 0, size_v1, jnp.int32),   # vertex ids
    ])

    # graph 2
    size_v2, size_e2, feat2, ne2 = 12, 6, 32, 20
    x2 = jax.random.normal(k5, (size_v2, feat2), jnp.float32)
    edge2 = jnp.stack([
        jax.random.randint(k6, (ne2,), 0, size_v2, jnp.int32),
        jax.random.randint(k7, (ne2,), 0, size_e2, jnp.int32),
        jax.random.randint(k8, (ne2,), 0, size_v2, jnp.int32),
    ])

    y1, y2 = agea_forward(x1, x2, edge1, edge2,
                          size_v1, size_e1, size_v2, size_e2)
    jax.block_until_ready((y1, y2))

    assert y1.shape == (size_v1, 4 * feat1) and y1.dtype == jnp.float32
    assert y2.shape == (size_v2, 4 * feat2) and y2.dtype == jnp.float32
    assert bool(jnp.all(jnp.isfinite(y1))) and bool(jnp.all(jnp.isfinite(y2)))

    # numerical sanity vs f32 reference (kernel uses bf16 operators -> loose tol)
    ref1 = gcn_reference(x1, edge1, size_v1, size_e1)
    ref2 = gcn_reference(x2, edge2, size_v2, size_e2)
    err1 = float(jnp.max(jnp.abs(y1 - ref1)))
    err2 = float(jnp.max(jnp.abs(y2 - ref2)))
    assert err1 < 5e-2 and err2 < 5e-2, (err1, err2)

    print("KERNEL_OK")
</pallas_src>

<mosaic_0001>
module attributes {stable_mosaic.version = 11 : i64} {
  func.func @_stage_kernel(%arg0: i32, %arg1: i32, %arg2: memref<128x128xbf16, #tpu.memory_space<vmem>>, %arg3: memref<128x128xf32, #tpu.memory_space<vmem>>, %arg4: memref<128x128xf32, #tpu.memory_space<vmem>>, %arg5: memref<128x128xf32, #tpu.memory_space<vmem>>) attributes {dimension_semantics = [#tpu.dimension_semantics<parallel>, #tpu.dimension_semantics<arbitrary>], iteration_bounds = array<i64: 1, 1>, scalar_prefetch = 0 : i64, scratch_operands = 1 : i64, tpu.core_type = #tpu.core_type<tc>, window_params = [{transform_indices = @transform_0, window_bounds = array<i64: 128, 128>}, {transform_indices = @transform_1, window_bounds = array<i64: 128, 128>}, {transform_indices = @transform_2, window_bounds = array<i64: 128, 128>}]} {
    %c0_i32 = arith.constant 0 : i32
    %0 = arith.cmpi eq, %arg1, %c0_i32 : i32
    %1 = arith.extui %0 : i1 to i32
    %c0_i32_0 = arith.constant 0 : i32
    %2 = arith.cmpi ne, %1, %c0_i32_0 : i32
    scf.if %2 {
      %cst_10 = arith.constant 0.000000e+00 : f32
      %13 = vector.broadcast %cst_10 : f32 to vector<128x128xf32>
      %c0_11 = arith.constant 0 : index
      %c0_12 = arith.constant 0 : index
      %14 = vector.load %arg5[%c0_11, %c0_12] : memref<128x128xf32, #tpu.memory_space<vmem>>, vector<128x128xf32>
      tpu.vector_store %arg5[%c0_11, %c0_12], %13 {strides = array<i32>} : memref<128x128xf32, #tpu.memory_space<vmem>>, vector<128x128xf32>,
    } else {
    }
    %c0 = arith.constant 0 : index
    %c0_1 = arith.constant 0 : index
    %3 = vector.load %arg5[%c0, %c0_1] : memref<128x128xf32, #tpu.memory_space<vmem>>, vector<128x128xf32>
    %c0_2 = arith.constant 0 : index
    %c0_3 = arith.constant 0 : index
    %4 = vector.load %arg2[%c0_2, %c0_3] : memref<128x128xbf16, #tpu.memory_space<vmem>>, vector<128x128xbf16>
    %c0_4 = arith.constant 0 : index
    %c0_5 = arith.constant 0 : index
    %5 = vector.load %arg3[%c0_4, %c0_5] : memref<128x128xf32, #tpu.memory_space<vmem>>, vector<128x128xf32>
    %6 = arith.truncf %5 : vector<128x128xf32> to vector<128x128xbf16>
    %cst = arith.constant dense<0.000000e+00> : vector<128x128xf32>
    %7 = tpu.matmul %4, %6, %cst {dimension_numbers = #tpu.dot_dimension_numbers<[1], [0], [0], [1], [0, 0, 1, 1], [], []>} : vector<128x128xbf16>, vector<128x128xbf16>, vector<128x128xf32> -> vector<128x128xf32>
    %8 = arith.addf %3, %7 : vector<128x128xf32>
    %c0_6 = arith.constant 0 : index
    %c0_7 = arith.constant 0 : index
    %9 = vector.load %arg5[%c0_6, %c0_7] : memref<128x128xf32, #tpu.memory_space<vmem>>, vector<128x128xf32>
    tpu.vector_store %arg5[%c0_6, %c0_7], %8 {strides = array<i32>} : memref<128x128xf32, #tpu.memory_space<vmem>>, vector<128x128xf32>,
    %c0_i32_8 = arith.constant 0 : i32
    %10 = arith.cmpi eq, %arg1, %c0_i32_8 : i32
    %11 = arith.extui %10 : i1 to i32
    %c0_i32_9 = arith.constant 0 : i32
    %12 = arith.cmpi ne, %11, %c0_i32_9 : i32
    scf.if %12 {
      %c0_10 = arith.constant 0 : index
      %c0_11 = arith.constant 0 : index
      %13 = vector.load %arg5[%c0_10, %c0_11] : memref<128x128xf32, #tpu.memory_space<vmem>>, vector<128x128xf32>
      %cst_12 = arith.constant 0.000000e+00 : f32
      %14 = vector.broadcast %cst_12 : f32 to vector<128x128xf32>
      %15 = arith.maximumf %13, %14 : vector<128x128xf32>
      %16 = arith.mulf %15, %15 : vector<128x128xf32>
      %cst_13 = arith.constant dense<0.000000e+00> : vector<128xf32>
      %17 = vector.multi_reduction <add>, %16, %cst_13 [1] : vector<128x128xf32> to vector<128xf32>
      %18 = vector.shape_cast %17 : vector<128xf32> to vector<128x1xf32>
      %cst_14 = arith.constant 1.000000e-24 : f32
      %19 = vector.broadcast %cst_14 : f32 to vector<128x1xf32>
      %20 = arith.maximumf %18, %19 : vector<128x1xf32>
      %21 = math.rsqrt %20 : vector<128x1xf32>
      %22 = vector.broadcast %21 : vector<128x1xf32> to vector<128x128xf32>
      %23 = arith.mulf %15, %22 : vector<128x128xf32>
      %c0_15 = arith.constant 0 : index
      %c0_16 = arith.constant 0 : index
      %24 = vector.load %arg4[%c0_15, %c0_16] : memref<128x128xf32, #tpu.memory_space<vmem>>, vector<128x128xf32>
      tpu.vector_store %arg4[%c0_15, %c0_16], %23 {strides = array<i32>} : memref<128x128xf32, #tpu.memory_space<vmem>>, vector<128x128xf32>,
    } else {
    }
    return
  }
  func.func @transform_0(%arg0: i32, %arg1: i32) -> (i32, i32) {
    %c0_i32 = arith.constant 0 : i32
    return %arg0, %arg1 : i32, i32
  }
  func.func @transform_1(%arg0: i32, %arg1: i32) -> (i32, i32) {
    %c0_i32 = arith.constant 0 : i32
    %c0_i32_0 = arith.constant 0 : i32
    return %arg1, %c0_i32 : i32, i32
  }
  func.func @transform_2(%arg0: i32, %arg1: i32) -> (i32, i32) {
    %c0_i32 = arith.constant 0 : i32
    %c0_i32_0 = arith.constant 0 : i32
    return %arg0, %c0_i32 : i32, i32
  }
}

module attributes {stable_mosaic.version = 11 : i64} {
  func.func @_stage_kernel(%arg0: i32, %arg1: i32, %arg2: memref<128x128xbf16, #tpu.memory_space<vmem>>, %arg3: memref<128x128xf32, #tpu.memory_space<vmem>>, %arg4: memref<128x128xf32, #tpu.memory_space<vmem>>, %arg5: memref<128x128xf32, #tpu.memory_space<vmem>>) attributes {dimension_semantics = [#tpu.dimension_semantics<parallel>, #tpu.dimension_semantics<arbitrary>], iteration_bounds = array<i64: 1, 1>, scalar_prefetch = 0 : i64, scratch_operands = 1 : i64, tpu.core_type = #tpu.core_type<tc>, window_params = [{transform_indices = @transform_0, window_bounds = array<i64: 128, 128>}, {transform_indices = @transform_1, window_bounds = array<i64: 128, 128>}, {transform_indices = @transform_2, window_bounds = array<i64: 128, 128>}]} {
    %c0_i32 = arith.constant 0 : i32
    %0 = arith.cmpi eq, %arg1, %c0_i32 : i32
    %1 = arith.extui %0 : i1 to i32
    %c0_i32_0 = arith.constant 0 : i32
    %2 = arith.cmpi ne, %1, %c0_i32_0 : i32
    scf.if %2 {
      %cst_10 = arith.constant 0.000000e+00 : f32
      %13 = vector.broadcast %cst_10 : f32 to vector<128x128xf32>
      %c0_11 = arith.constant 0 : index
      %c0_12 = arith.constant 0 : index
      %14 = vector.load %arg5[%c0_11, %c0_12] : memref<128x128xf32, #tpu.memory_space<vmem>>, vector<128x128xf32>
      tpu.vector_store %arg5[%c0_11, %c0_12], %13 {strides = array<i32>} : memref<128x128xf32, #tpu.memory_space<vmem>>, vector<128x128xf32>,
    } else {
    }
    %c0 = arith.constant 0 : index
    %c0_1 = arith.constant 0 : index
    %3 = vector.load %arg5[%c0, %c0_1] : memref<128x128xf32, #tpu.memory_space<vmem>>, vector<128x128xf32>
    %c0_2 = arith.constant 0 : index
    %c0_3 = arith.constant 0 : index
    %4 = vector.load %arg2[%c0_2, %c0_3] : memref<128x128xbf16, #tpu.memory_space<vmem>>, vector<128x128xbf16>
    %c0_4 = arith.constant 0 : index
    %c0_5 = arith.constant 0 : index
    %5 = vector.load %arg3[%c0_4, %c0_5] : memref<128x128xf32, #tpu.memory_space<vmem>>, vector<128x128xf32>
    %6 = arith.truncf %5 : vector<128x128xf32> to vector<128x128xbf16>
    %cst = arith.constant dense<0.000000e+00> : vector<128x128xf32>
    %7 = tpu.matmul %4, %6, %cst {dimension_numbers = #tpu.dot_dimension_numbers<[1], [0], [0], [1], [0, 0, 1, 1], [], []>} : vector<128x128xbf16>, vector<128x128xbf16>, vector<128x128xf32> -> vector<128x128xf32>
    %8 = arith.addf %3, %7 : vector<128x128xf32>
    %c0_6 = arith.constant 0 : index
    %c0_7 = arith.constant 0 : index
    %9 = vector.load %arg5[%c0_6, %c0_7] : memref<128x128xf32, #tpu.memory_space<vmem>>, vector<128x128xf32>
    tpu.vector_store %arg5[%c0_6, %c0_7], %8 {strides = array<i32>} : memref<128x128xf32, #tpu.memory_space<vmem>>, vector<128x128xf32>,
    %c0_i32_8 = arith.constant 0 : i32
    %10 = arith.cmpi eq, %arg1, %c0_i32_8 : i32
    %11 = arith.extui %10 : i1 to i32
    %c0_i32_9 = arith.constant 0 : i32
    %12 = arith.cmpi ne, %11, %c0_i32_9 : i32
    scf.if %12 {
      %c0_10 = arith.constant 0 : index
      %c0_11 = arith.constant 0 : index
      %13 = vector.load %arg5[%c0_10, %c0_11] : memref<128x128xf32, #tpu.memory_space<vmem>>, vector<128x128xf32>
      %cst_12 = arith.constant 0.000000e+00 : f32
      %14 = vector.broadcast %cst_12 : f32 to vector<128x128xf32>
      %15 = arith.maximumf %13, %14 : vector<128x128xf32>
      %c0_13 = arith.constant 0 : index
      %c0_14 = arith.constant 0 : index
      %16 = vector.load %arg4[%c0_13, %c0_14] : memref<128x128xf32, #tpu.memory_space<vmem>>, vector<128x128xf32>
      tpu.vector_store %arg4[%c0_13, %c0_14], %15 {strides = array<i32>} : memref<128x128xf32, #tpu.memory_space<vmem>>, vector<128x128xf32>,
    } else {
    }
    return
  }
  func.func @transform_0(%arg0: i32, %arg1: i32) -> (i32, i32) {
    %c0_i32 = arith.constant 0 : i32
    return %arg0, %arg1 : i32, i32
  }
  func.func @transform_1(%arg0: i32, %arg1: i32) -> (i32, i32) {
    %c0_i32 = arith.constant 0 : i32
    %c0_i32_0 = arith.constant 0 : i32
    return %arg1, %c0_i32 : i32, i32
  }
  func.func @transform_2(%arg0: i32, %arg1: i32) -> (i32, i32) {
    %c0_i32 = arith.constant 0 : i32
    %c0_i32_0 = arith.constant 0 : i32
    return %arg0, %c0_i32 : i32, i32
  }
}

module attributes {stable_mosaic.version = 11 : i64} {
  func.func @_concat_norm_kernel(%arg0: i32, %arg1: memref<128x128xf32, #tpu.memory_space<vmem>>, %arg2: memref<128x128xf32, #tpu.memory_space<vmem>>, %arg3: memref<128x128xf32, #tpu.memory_space<vmem>>, %arg4: memref<128x128xf32, #tpu.memory_space<vmem>>, %arg5: memref<128x512xf32, #tpu.memory_space<vmem>>) attributes {dimension_semantics = [#tpu.dimension_semantics<parallel>], iteration_bounds = array<i64: 1>, scalar_prefetch = 0 : i64, scratch_operands = 0 : i64, tpu.core_type = #tpu.core_type<tc>, window_params = [{transform_indices = @transform_0, window_bounds = array<i64: 128, 128>}, {transform_indices = @transform_1, window_bounds = array<i64: 128, 128>}, {transform_indices = @transform_2, window_bounds = array<i64: 128, 128>}, {transform_indices = @transform_3, window_bounds = array<i64: 128, 128>}, {transform_indices = @transform_4, window_bounds = array<i64: 128, 512>}]} {
    %c0 = arith.constant 0 : index
    %c0_0 = arith.constant 0 : index
    %0 = vector.load %arg1[%c0, %c0_0] : memref<128x128xf32, #tpu.memory_space<vmem>>, vector<128x128xf32>
    %c0_1 = arith.constant 0 : index
    %c0_2 = arith.constant 0 : index
    %1 = vector.load %arg2[%c0_1, %c0_2] : memref<128x128xf32, #tpu.memory_space<vmem>>, vector<128x128xf32>
    %c0_3 = arith.constant 0 : index
    %c0_4 = arith.constant 0 : index
    %2 = vector.load %arg3[%c0_3, %c0_4] : memref<128x128xf32, #tpu.memory_space<vmem>>, vector<128x128xf32>
    %c0_5 = arith.constant 0 : index
    %c0_6 = arith.constant 0 : index
    %3 = vector.load %arg4[%c0_5, %c0_6] : memref<128x128xf32, #tpu.memory_space<vmem>>, vector<128x128xf32>
    %4 = arith.mulf %0, %0 : vector<128x128xf32>
    %cst = arith.constant dense<0.000000e+00> : vector<128xf32>
    %5 = vector.multi_reduction <add>, %4, %cst [1] : vector<128x128xf32> to vector<128xf32>
    %6 = vector.shape_cast %5 : vector<128xf32> to vector<128x1xf32>
    %7 = arith.mulf %1, %1 : vector<128x128xf32>
    %cst_7 = arith.constant dense<0.000000e+00> : vector<128xf32>
    %8 = vector.multi_reduction <add>, %7, %cst_7 [1] : vector<128x128xf32> to vector<128xf32>
    %9 = vector.shape_cast %8 : vector<128xf32> to vector<128x1xf32>
    %10 = arith.addf %6, %9 : vector<128x1xf32>
    %11 = arith.mulf %2, %2 : vector<128x128xf32>
    %cst_8 = arith.constant dense<0.000000e+00> : vector<128xf32>
    %12 = vector.multi_reduction <add>, %11, %cst_8 [1] : vector<128x128xf32> to vector<128xf32>
    %13 = vector.shape_cast %12 : vector<128xf32> to vector<128x1xf32>
    %14 = arith.addf %10, %13 : vector<128x1xf32>
    %15 = arith.mulf %3, %3 : vector<128x128xf32>
    %cst_9 = arith.constant dense<0.000000e+00> : vector<128xf32>
    %16 = vector.multi_reduction <add>, %15, %cst_9 [1] : vector<128x128xf32> to vector<128xf32>
    %17 = vector.shape_cast %16 : vector<128xf32> to vector<128x1xf32>
    %18 = arith.addf %14, %17 : vector<128x1xf32>
    %cst_10 = arith.constant 1.000000e-24 : f32
    %19 = vector.broadcast %cst_10 : f32 to vector<128x1xf32>
    %20 = arith.maximumf %18, %19 : vector<128x1xf32>
    %21 = math.rsqrt %20 : vector<128x1xf32>
    %22 = vector.broadcast %21 : vector<128x1xf32> to vector<128x128xf32>
    %23 = arith.mulf %0, %22 : vector<128x128xf32>
    %c0_11 = arith.constant 0 : index
    %c0_12 = arith.constant 0 : index
    %24 = vector.load %arg5[%c0_11, %c0_12] : memref<128x512xf32, #tpu.memory_space<vmem>>, vector<128x128xf32>
    tpu.vector_store %arg5[%c0_11, %c0_12], %23 {strides = array<i32>} : memref<128x512xf32, #tpu.memory_space<vmem>>, vector<128x128xf32>,
    %25 = vector.broadcast %21 : vector<128x1xf32> to vector<128x128xf32>
    %26 = arith.mulf %1, %25 : vector<128x128xf32>
    %c0_13 = arith.constant 0 : index
    %c128 = arith.constant 128 : index
    %27 = vector.load %arg5[%c0_13, %c128] : memref<128x512xf32, #tpu.memory_space<vmem>>, vector<128x128xf32>
    tpu.vector_store %arg5[%c0_13, %c128], %26 {strides = array<i32>} : memref<128x512xf32, #tpu.memory_space<vmem>>, vector<128x128xf32>,
    %28 = vector.broadcast %21 : vector<128x1xf32> to vector<128x128xf32>
    %29 = arith.mulf %2, %28 : vector<128x128xf32>
    %c0_14 = arith.constant 0 : index
    %c256 = arith.constant 256 : index
    %30 = vector.load %arg5[%c0_14, %c256] : memref<128x512xf32, #tpu.memory_space<vmem>>, vector<128x128xf32>
    tpu.vector_store %arg5[%c0_14, %c256], %29 {strides = array<i32>} : memref<128x512xf32, #tpu.memory_space<vmem>>, vector<128x128xf32>,
    %31 = vector.broadcast %21 : vector<128x1xf32> to vector<128x128xf32>
    %32 = arith.mulf %3, %31 : vector<128x128xf32>
    %c0_15 = arith.constant 0 : index
    %c384 = arith.constant 384 : index
    %33 = vector.load %arg5[%c0_15, %c384] : memref<128x512xf32, #tpu.memory_space<vmem>>, vector<128x128xf32>
    tpu.vector_store %arg5[%c0_15, %c384], %32 {strides = array<i32>} : memref<128x512xf32, #tpu.memory_space<vmem>>, vector<128x128xf32>,
    return
  }
  func.func @transform_0(%arg0: i32) -> (i32, i32) {
    %c0_i32 = arith.constant 0 : i32
    %c0_i32_0 = arith.constant 0 : i32
    return %arg0, %c0_i32 : i32, i32
  }
  func.func @transform_1(%arg0: i32) -> (i32, i32) {
    %c0_i32 = arith.constant 0 : i32
    %c0_i32_0 = arith.constant 0 : i32
    return %arg0, %c0_i32 : i32, i32
  }
  func.func @transform_2(%arg0: i32) -> (i32, i32) {
    %c0_i32 = arith.constant 0 : i32
    %c0_i32_0 = arith.constant 0 : i32
    return %arg0, %c0_i32 : i32, i32
  }
  func.func @transform_3(%arg0: i32) -> (i32, i32) {
    %c0_i32 = arith.constant 0 : i32
    %c0_i32_0 = arith.constant 0 : i32
    return %arg0, %c0_i32 : i32, i32
  }
  func.func @transform_4(%arg0: i32) -> (i32, i32) {
    %c0_i32 = arith.constant 0 : i32
    %c0_i32_0 = arith.constant 0 : i32
    return %arg0, %c0_i32 : i32, i32
  }
}

</mosaic_0001>

<bundles_post_ra>
// kernel: agea_forward.17
= control target key start
LH: loop header
LB: loop body
LE: loop exit
PB: predicated region body
PF: predicated region fallthrough
CT: control target
= control target key end

     0   :  { %s895_s1 = inlined_call_operand.vmem [shape: f32[128,128], index: 1, kind: input, shape index: {}]   ;;  %s896_s0 = inlined_call_operand.vmem [shape: bf16[128,128], index: 0, kind: input, shape index: {}]   ;;  %s897_s2 = inlined_call_operand.vmem [shape: f32[128,128], index: 2, kind: output, shape index: {}]  }
   0x1   :  { %v77_v0 = vld [vmem:[%s895_s1 + $0x70] sm:$0xff]  ;;  %v78_v1 = vld [vmem:[%s895_s1 + $0x78] sm:$0xff]  ;;  %v75_v2 = vld [vmem:[%s895_s1 + $0x60] sm:$0xff] }
   0x2   :  { %v86_v3 = vpack.c.bf16 %v78_v1, %v77_v0  ;;  %v76_v4 = vld [vmem:[%s895_s1 + $0x68] sm:$0xff]  ;;  %v73_v6 = vld [vmem:[%s895_s1 + $0x50] sm:$0xff]  ;;  %v74_v7 = vld [vmem:[%s895_s1 + $0x58] sm:$0xff] }
   0x3   :  { %v85_v5 = vpack.c.bf16 %v76_v4, %v75_v2  ;;  %v84_v8 = vpack.c.bf16 %v74_v7, %v73_v6  ;;  %v71_v9 = vld [vmem:[%s895_s1 + $0x40] sm:$0xff]  ;;  %v72_v10 = vld [vmem:[%s895_s1 + $0x48] sm:$0xff]  ;;  %v69_v12 = vld [vmem:[%s895_s1 + $0x30] sm:$0xff] }
   0x4   :  { %135 = vmatpush.bf16.msra.mxu0 %v86_v3  ;;  %551 = vmatpush.bf16.msra.mxu1 %v86_v3  ;;  %v83_v11 = vpack.c.bf16 %v72_v10, %v71_v9  ;;  %v70_v13 = vld [vmem:[%s895_s1 + $0x38] sm:$0xff]  ;;  %v67_v15 = vld [vmem:[%s895_s1 + $0x20] sm:$0xff]  ;;  %v68_v16 = vld [vmem:[%s895_s1 + $0x28] sm:$0xff] }
   0x5   :  { %552 = vmatpush.bf16.msra.mxu2 %v86_v3  ;;  %553 = vmatpush.bf16.msra.mxu3 %v86_v3  ;;  %v82_v14 = vpack.c.bf16 %v70_v13, %v69_v12  ;;  %v81_v17 = vpack.c.bf16 %v68_v16, %v67_v15  ;;  %v65_v18 = vld [vmem:[%s895_s1 + $0x10] sm:$0xff]  ;;  %v66_v19 = vld [vmem:[%s895_s1 + $0x18] sm:$0xff]  ;;  %v63_v21 = vld [vmem:[%s895_s1] sm:$0xff] }
   0x6   :  { %v80_v20 = vpack.c.bf16 %v66_v19, %v65_v18  ;;  %v64_v22 = vld [vmem:[%s895_s1 + $0x8] sm:$0xff]  ;;  %v543_v24 = vld [vmem:[%s896_s0] sm:$0xff]  ;;  %v545_v25 = vld [vmem:[%s896_s0 + $0x10] sm:$0xff] }
   0x7   :  { %v79_v23 = vpack.c.bf16 %v64_v22, %v63_v21  ;;  %v547_v26 = vld [vmem:[%s896_s0 + $0x20] sm:$0xff]  ;;  %v549_v27 = vld [vmem:[%s896_s0 + $0x30] sm:$0xff]  ;;  %v544_v28 = vld [vmem:[%s896_s0 + $0x8] sm:$0xff] }
   0x8   :  { %136 = vmatpush.bf16.msra.mxu0 %v85_v5  ;;  %554 = vmatpush.bf16.msra.mxu1 %v85_v5  ;;  %v546_v29 = vld [vmem:[%s896_s0 + $0x18] sm:$0xff]  ;;  %v548_v30 = vld [vmem:[%s896_s0 + $0x28] sm:$0xff] }
   0x9   :  { %555 = vmatpush.bf16.msra.mxu2 %v85_v5  ;;  %556 = vmatpush.bf16.msra.mxu3 %v85_v5  ;;  %v550_v31 = vld [vmem:[%s896_s0 + $0x38] sm:$0xff] }
   0xc   :  { %137 = vmatpush.bf16.msra.mxu0 %v84_v8  ;;  %557 = vmatpush.bf16.msra.mxu1 %v84_v8 }
   0xd   :  { %558 = vmatpush.bf16.msra.mxu2 %v84_v8  ;;  %559 = vmatpush.bf16.msra.mxu3 %v84_v8 }
  0x10   :  { %138 = vmatpush.bf16.msra.mxu0 %v83_v11  ;;  %560 = vmatpush.bf16.msra.mxu1 %v83_v11 }
  0x11   :  { %561 = vmatpush.bf16.msra.mxu2 %v83_v11  ;;  %562 = vmatpush.bf16.msra.mxu3 %v83_v11 }
  0x14   :  { %139 = vmatpush.bf16.msra.mxu0 %v82_v14  ;;  %563 = vmatpush.bf16.msra.mxu1 %v82_v14 }
  0x15   :  { %564 = vmatpush.bf16.msra.mxu2 %v82_v14  ;;  %565 = vmatpush.bf16.msra.mxu3 %v82_v14 }
  0x18   :  { %140 = vmatpush.bf16.msra.mxu0 %v81_v17  ;;  %566 = vmatpush.bf16.msra.mxu1 %v81_v17 }
  0x19   :  { %567 = vmatpush.bf16.msra.mxu2 %v81_v17  ;;  %568 = vmatpush.bf16.msra.mxu3 %v81_v17 }
  0x1c   :  { %141 = vmatpush.bf16.msra.mxu0 %v80_v20  ;;  %569 = vmatpush.bf16.msra.mxu1 %v80_v20 }
  0x1d   :  { %570 = vmatpush.bf16.msra.mxu2 %v80_v20  ;;  %571 = vmatpush.bf16.msra.mxu3 %v80_v20 }
  0x20   :  { %142 = vmatpush.bf16.msra.mxu0 %v79_v23  ;;  %572 = vmatpush.bf16.msra.mxu1 %v79_v23 }
  0x21   :  { %573 = vmatpush.bf16.msra.mxu2 %v79_v23  ;;  %574 = vmatpush.bf16.msra.mxu3 %v79_v23 }
  0x23   :  { %143 = vmatmul.bf16.vlgmr.msra.gmra.mxu0 %v543_v24  ;;  %153 = vmatmul.bf16.vlgmr.msra.gmra.mxu1 %v545_v25 }
  0x24   :  { %163 = vmatmul.bf16.vlgmr.msra.gmra.mxu2 %v547_v26  ;;  %173 = vmatmul.bf16.vlgmr.msra.gmra.mxu3 %v549_v27 }
  0x33   :  { %148 = vmatmul.bf16.gmra.mxu0 %v544_v28  ;;  %158 = vmatmul.bf16.gmra.mxu1 %v546_v29 }
  0x34   :  { %168 = vmatmul.bf16.gmra.mxu2 %v548_v30  ;;  %178 = vmatmul.bf16.gmra.mxu3 %v550_v31 }
  0xa0   :  { %v144_v32 = vpop.f32.mrf.mxu0  ;;  %v154_v33 = vpop.f32.mrf.mxu1 }
  0xa1   :  { %v694_v34 = vmax.f32 %v144_v32, 0.0  ;;  %v696_v35 = vmax.f32 %v154_v33, 0.0 }
  0xa3   :  { %v255_v36 = vmul.f32 %v696_v35, %v696_v35  ;;  %v251_v37 = vmul.f32 %v694_v34, %v694_v34 }
  0xa5   :  { %275 = vadd.xlane.f32.xlu2 %v255_v36  ;;  %267 = vadd.xlane.f32.xlu0 %v251_v37 }
  0xa7   :  { %v164_v38 = vpop.f32.mrf.mxu2  ;;  %v174_v39 = vpop.f32.mrf.mxu3 }
  0xa8   :  { %v702_v40 = vmax.f32 %v164_v38, 0.0  ;;  %v146_v41 = vpop.f32.mrf.mxu0  ;;  %v704_v42 = vmax.f32 %v174_v39, 0.0  ;;  %v156_v45 = vpop.f32.mrf.mxu1 }
  0xa9   :  { %v710_v46 = vmax.f32 %v156_v45, 0.0  ;;  %v712_v47 = vmax.f32 %v146_v41, 0.0 }
  0xaa   :  { %v259_v43 = vmul.f32 %v702_v40, %v702_v40  ;;  %v263_v44 = vmul.f32 %v704_v42, %v704_v42 }
  0xab   :  { %v256_v52 = vmul.f32 %v710_v46, %v710_v46  ;;  %v252_v53 = vmul.f32 %v712_v47, %v712_v47 }
  0xad   :  { %283 = vadd.xlane.f32.xlu2 %v259_v43  ;;  %291 = vadd.xlane.f32.xlu0 %v263_v44 }
  0xaf   :  { %v166_v48 = vpop.f32.mrf.mxu2  ;;  %v176_v50 = vpop.f32.mrf.mxu3 }
  0xb0   :  { %v149_v49 = vpop.f32.mrf.mxu0  ;;  %v722_v55 = vmax.f32 %v166_v48, 0.0  ;;  %v159_v60 = vpop.f32.mrf.mxu1  ;;  %v754_v14 = vmax.f32 %v176_v50, 0.0 }
  0xb1   :  { %v714_v51 = vmax.f32 %v149_v49, 0.0  ;;  %v730_v63 = vmax.f32 %v159_v60, 0.0 }
  0xb2   :  { %v260_v61 = vmul.f32 %v722_v55, %v722_v55  ;;  %v264_v15 = vmul.f32 %v754_v14, %v754_v14 }
  0xb3   :  { %v253_v54 = vmul.f32 %v714_v51, %v714_v51  ;;  %v257_v3 = vmul.f32 %v730_v63, %v730_v63 }
  0xb5   :  { %277 = vadd.xlane.f32.xlu2 %v256_v52  ;;  %269 = vadd.xlane.f32.xlu0 %v252_v53 }
  0xb6   :  { %271 = vadd.xlane.f32.xlu1 %v253_v54 }
  0xb7   :  { %v169_v56 = vpop.f32.mrf.mxu2  ;;  %v179_v58 = vpop.f32.mrf.mxu3 }
  0xb8   :  { %v724_v57 = vmax.f32 %v169_v56, 0.0  ;;  %v151_v62 = vpop.f32.mrf.mxu0  ;;  %v740_v6 = vmax.f32 %v179_v58, 0.0  ;;  %v161_v8 = vpop.f32.mrf.mxu1 }
  0xb9   :  { %v732_v1 = vmax.f32 %v151_v62, 0.0  ;;  %v746_v10 = vmax.f32 %v161_v8, 0.0 }
  0xba   :  { %v261_v59 = vmul.f32 %v724_v57, %v724_v57  ;;  %v265_v11 = vmul.f32 %v740_v6, %v740_v6 }
  0xbb   :  { %v254_v7 = vmul.f32 %v732_v1, %v732_v1  ;;  %v258_v13 = vmul.f32 %v746_v10, %v746_v10 }
  0xbd   :  { %285 = vadd.xlane.f32.xlu0 %v260_v61 }
  0xbe   :  { %287 = vadd.xlane.f32.xlu1 %v261_v59 }
  0xbf   :  { %v171_v0 = vpop.f32.mrf.mxu2  ;;  %v181_v5 = vpop.f32.mrf.mxu3 }
  0xc0   :  { %v734_v2 = vmax.f32 %v171_v0, 0.0  ;;  %v744_v9 = vmax.f32 %v181_v5, 0.0 }
  0xc2   :  { %v262_v4 = vmul.f32 %v734_v2, %v734_v2  ;;  %v266_v12 = vmul.f32 %v744_v9, %v744_v9 }
  0xc4   :  { %289 = vadd.xlane.f32.xlu2 %v262_v4 }
  0xc5   :  { %279 = vadd.xlane.f32.xlu0 %v257_v3 }
  0xc6   :  { %273 = vadd.xlane.f32.xlu1 %v254_v7 }
  0xcc   :  { %295 = vadd.xlane.f32.xlu2 %v265_v11 }
  0xcd   :  { %297 = vadd.xlane.f32.xlu0 %v266_v12 }
  0xce   :  { %281 = vadd.xlane.f32.xlu1 %v258_v13 }
  0xd6   :  { %293 = vadd.xlane.f32.xlu1 %v264_v15 }
 0x118   :  { %v276_v16 = vpop.xlane.xlu2 %275  ;;  %v268_v17 = vpop.xlane.xlu0 %267 }
 0x119   :  { %v303_v18 = vmax.f32 %v276_v16, 1e-24  ;;  %v299_v19 = vmax.f32 %v268_v17, 1e-24 }
 0x11b   :  { %575 = vrsqrt.f32 %v303_v18  ;;  %vm361_vm0 = vweird.f32 %v303_v18  ;;  %vm321_vm4 = vweird.f32 %v299_v19 }
 0x11c   :  { %577 = vrsqrt.f32 %v299_v19 }
 0x120   :  { %v284_v20 = vpop.xlane.xlu2 %283  ;;  %v292_v21 = vpop.xlane.xlu0 %291 }
 0x121   :  { %v576_v22 = vpop.eup %575  ;;  %v307_v23 = vmax.f32 %v284_v20, 1e-24  ;;  %v758_v24 = vmax.f32 %v292_v21, 1e-24 }
 0x122   :  { %v578_v25 = vpop.eup %577  ;;  %v356_v26 = vmul.f32 %v576_v22, %v303_v18  ;;  %vm362_vm1 = vweird.f32 %v576_v22 }
 0x123   :  { %v316_v27 = vmul.f32 %v578_v25, %v299_v19  ;;  %579 = vrsqrt.f32 %v307_v23  ;;  %vm761_vm2 = vmor %vm361_vm0, %vm362_vm1  ;;  %vm322_vm3 = vweird.f32 %v578_v25  ;;  %vm441_vm7 = vweird.f32 %v758_v24 }
 0x124   :  { %v357_v28 = vmul.f32 %v576_v22, %v356_v26  ;;  %581 = vrsqrt.f32 %v758_v24  ;;  %vm323_vm5 = vmor %vm321_vm4, %vm322_vm3  ;;  %vm401_vm9 = vweird.f32 %v307_v23 }
 0x125   :  { %v317_v29 = vmul.f32 %v578_v25, %v316_v27 }
 0x126   :  { %v358_v30 = vmul.f32 0.5, %v357_v28 }
 0x127   :  { %v318_v31 = vmul.f32 0.5, %v317_v29 }
 0x128   :  { %v359_v32 = vsub.f32 1.5, %v358_v30  ;;  %v278_v33 = vpop.xlane.xlu2 %277  ;;  %v270_v36 = vpop.xlane.xlu0 %269 }
 0x129   :  { %v580_v37 = vpop.eup %579  ;;  %v319_v39 = vsub.f32 1.5, %v318_v31  ;;  %v765_v41 = vmax.f32 %v278_v33, 1e-24  ;;  %v767_v43 = vmax.f32 %v270_v36, 1e-24  ;;  %v272_v44 = vpop.xlane.xlu1 %271 }
 0x12a   :  { %v582_v45 = vpop.eup %581  ;;  %v360_v48 = vmul.f32 %v576_v22, %v359_v32  ;;  %v396_v49 = vmul.f32 %v580_v37, %v307_v23  ;;  %v769_v50 = vmax.f32 %v272_v44, 1e-24  ;;  %vm402_vm6 = vweird.f32 %v580_v37 }
 0x12b   :  { %v320_v52 = vmul.f32 %v578_v25, %v319_v39  ;;  %v436_v53 = vmul.f32 %v582_v45, %v758_v24  ;;  %583 = vrsqrt.f32 %v765_v41  ;;  %vm442_vm8 = vweird.f32 %v582_v45  ;;  %vm403_vm10 = vmor %vm401_vm9, %vm402_vm6 }
 0x12c   :  { %v364_v54 = vsel %vm761_vm2, %v576_v22, %v360_v48  ;;  %v397_v56 = vmul.f32 %v580_v37, %v396_v49  ;;  %585 = vrsqrt.f32 %v767_v43  ;;  %vm443_vm11 = vmor %vm441_vm7, %vm442_vm8  ;;  %vm371_vm12 = vweird.f32 %v765_v41 }
 0x12d   :  { %v479_v58 = vmul.f32 %v364_v54, %v696_v35  ;;  %v324_v59 = vsel %vm323_vm5, %v578_v25, %v320_v52  ;;  %v437_v60 = vmul.f32 %v582_v45, %v436_v53  ;;  %587 = vrsqrt.f32 %v769_v50 }
 0x12e   :  { %v475_v61 = vmul.f32 %v324_v59, %v694_v34  ;;  %v398_v62 = vmul.f32 0.5, %v397_v56  ;;  %vm331_vm15 = vweird.f32 %v767_v43  ;;  %vm341_vm3 = vweird.f32 %v769_v50 }
 0x12f   :  { %495 = vst [vmem:[%s897_s2 + $0x20] sm:$0xff] %v479_v58  ;;  %v438_v0 = vmul.f32 0.5, %v437_v60 }
 0x130   :  { %491 = vst [vmem:[%s897_s2] sm:$0xff] %v475_v61  ;;  %v399_v3 = vsub.f32 1.5, %v398_v62  ;;  %v286_v4 = vpop.xlane.xlu0 %285 }
 0x131   :  { %v584_v35 = vpop.eup %583  ;;  %v439_v5 = vsub.f32 1.5, %v438_v0  ;;  %v786_v34 = vmax.f32 %v286_v4, 1e-24  ;;  %v288_v7 = vpop.xlane.xlu1 %287 }
 0x132   :  { %v586_v8 = vpop.eup %585  ;;  %v400_v11 = vmul.f32 %v580_v37, %v399_v3  ;;  %v366_v12 = vmul.f32 %v584_v35, %v765_v41  ;;  %v789_v13 = vmax.f32 %v288_v7, 1e-24  ;;  %vm372_vm13 = vweird.f32 %v584_v35 }
 0x133   :  { %v440_v15 = vmul.f32 %v582_v45, %v439_v5  ;;  %v326_v16 = vmul.f32 %v586_v8, %v767_v43  ;;  %589 = vrsqrt.f32 %v786_v34  ;;  %v588_v17 = vpop.eup %587  ;;  %vm332_vm14 = vweird.f32 %v586_v8  ;;  %vm373_vm0 = vmor %vm371_vm12, %vm372_vm13 }
 0x134   :  { %v404_v18 = vsel %vm403_vm10, %v580_v37, %v400_v11  ;;  %v367_v19 = vmul.f32 %v584_v35, %v366_v12  ;;  %591 = vrsqrt.f32 %v789_v13  ;;  %v336_v23 = vmul.f32 %v588_v17, %v769_v50  ;;  %vm333_vm2 = vmor %vm331_vm15, %vm332_vm14 }
 0x135   :  { %v483_v20 = vmul.f32 %v404_v18, %v702_v40  ;;  %v444_v21 = vsel %vm443_vm11, %v582_v45, %v440_v15  ;;  %v327_v22 = vmul.f32 %v586_v8, %v326_v16  ;;  %vm342_vm1 = vweird.f32 %v588_v17 }
 0x136   :  { %v487_v25 = vmul.f32 %v444_v21, %v704_v42  ;;  %v368_v26 = vmul.f32 0.5, %v367_v19  ;;  %v337_v28 = vmul.f32 %v588_v17, %v336_v23  ;;  %vm343_vm4 = vmor %vm341_vm3, %vm342_vm1  ;;  %vm411_vm7 = vweird.f32 %v786_v34 }
 0x137   :  { %499 = vst [vmem:[%s897_s2 + $0x40] sm:$0xff] %v483_v20  ;;  %v328_v27 = vmul.f32 0.5, %v327_v22  ;;  %v290_v24 = vpop.xlane.xlu2 %289  ;;  %vm421_vm9 = vweird.f32 %v789_v13 }
 0x138   :  { %503 = vst [vmem:[%s897_s2 + $0x60] sm:$0xff] %v487_v25  ;;  %v369_v29 = vsub.f32 1.5, %v368_v26  ;;  %v806_v40 = vmax.f32 %v290_v24, 1e-24  ;;  %v280_v30 = vpop.xlane.xlu0 %279  ;;  %v338_v32 = vmul.f32 0.5, %v337_v28 }
 0x139   :  { %v590_v42 = vpop.eup %589  ;;  %v329_v31 = vsub.f32 1.5, %v328_v27  ;;  %v808_v33 = vmax.f32 %v280_v30, 1e-24  ;;  %v274_v36 = vpop.xlane.xlu1 %273 }
 0x13a   :  { %v592_v37 = vpop.eup %591  ;;  %v370_v38 = vmul.f32 %v584_v35, %v369_v29  ;;  %v406_v39 = vmul.f32 %v590_v42, %v786_v34  ;;  %593 = vrsqrt.f32 %v806_v40  ;;  %v339_v45 = vsub.f32 1.5, %v338_v32 }
 0x13b   :  { %v330_v44 = vmul.f32 %v586_v8, %v329_v31  ;;  %v416_v48 = vmul.f32 %v592_v37, %v789_v13  ;;  %595 = vrsqrt.f32 %v808_v33  ;;  %v821_v59 = vmax.f32 %v274_v36, 1e-24 }
 0x13c   :  { %v374_v49 = vsel %vm373_vm0, %v584_v35, %v370_v38  ;;  %v407_v52 = vmul.f32 %v590_v42, %v406_v39  ;;  %v340_v54 = vmul.f32 %v588_v17, %v339_v45  ;;  %vm412_vm5 = vweird.f32 %v590_v42 }
 0x13d   :  { %v480_v43 = vmul.f32 %v374_v49, %v710_v46  ;;  %v334_v53 = vsel %vm333_vm2, %v586_v8, %v330_v44  ;;  %v417_v56 = vmul.f32 %v592_v37, %v416_v48  ;;  %597 = vrsqrt.f32 %v821_v59  ;;  %vm413_vm8 = vmor %vm411_vm7, %vm412_vm5 }
 0x13e   :  { %v476_v41 = vmul.f32 %v334_v53, %v712_v47  ;;  %v408_v58 = vmul.f32 0.5, %v407_v52  ;;  %v344_v60 = vsel %vm343_vm4, %v588_v17, %v340_v54  ;;  %vm422_vm6 = vweird.f32 %v592_v37 }
 0x13f   :  { %496 = vst [vmem:[%s897_s2 + $0x28] sm:$0xff] %v480_v43  ;;  %v418_v50 = vmul.f32 0.5, %v417_v56  ;;  %v296_v61 = vpop.xlane.xlu2 %295  ;;  %v477_v46 = vmul.f32 %v344_v60, %v714_v51  ;;  %vm423_vm10 = vmor %vm421_vm9, %vm422_vm6  ;;  %vm431_vm12 = vweird.f32 %v806_v40  ;;  %vm381_vm15 = vweird.f32 %v808_v33 }
 0x140   :  { %v594_v62 = vpop.eup %593  ;;  %492 = vst [vmem:[%s897_s2 + $0x8] sm:$0xff] %v476_v41  ;;  %v409_v0 = vsub.f32 1.5, %v408_v58  ;;  %v298_v47 = vpop.xlane.xlu0 %297  ;;  %v832_v35 = vmax.f32 %v296_v61, 1e-24  ;;  %vm351_vm2 = vweird.f32 %v821_v59 }
 0x141   :  { %v419_v3 = vsub.f32 1.5, %v418_v50  ;;  %v426_v4 = vmul.f32 %v594_v62, %v806_v40  ;;  %v282_v5 = vpop.xlane.xlu1 %281  ;;  %v596_v7 = vpop.eup %595  ;;  %493 = vst [vmem:[%s897_s2 + $0x10] sm:$0xff] %v477_v46  ;;  %v838_v51 = vmax.f32 %v298_v47, 1e-24  ;;  %vm432_vm11 = vweird.f32 %v594_v62 }
 0x142   :  { %v410_v8 = vmul.f32 %v590_v42, %v409_v0  ;;  %v376_v15 = vmul.f32 %v596_v7, %v808_v33  ;;  %599 = vrsqrt.f32 %v832_v35  ;;  %v844_v17 = vmax.f32 %v282_v5, 1e-24  ;;  %vm433_vm14 = vmor %vm431_vm12, %vm432_vm11 }
 0x143   :  { %v420_v11 = vmul.f32 %v592_v37, %v419_v3  ;;  %v427_v12 = vmul.f32 %v594_v62, %v426_v4  ;;  %v598_v21 = vpop.eup %597  ;;  %601 = vrsqrt.f32 %v838_v51  ;;  %vm382_vm13 = vweird.f32 %v596_v7 }
 0x144   :  { %v414_v16 = vsel %vm413_vm8, %v590_v42, %v410_v8  ;;  %v377_v20 = vmul.f32 %v596_v7, %v376_v15  ;;  %v346_v25 = vmul.f32 %v598_v21, %v821_v59  ;;  %603 = vrsqrt.f32 %v844_v17  ;;  %vm383_vm0 = vmor %vm381_vm15, %vm382_vm13 }
 0x145   :  { %v484_v18 = vmul.f32 %v414_v16, %v722_v55  ;;  %v424_v19 = vsel %vm423_vm10, %v592_v37, %v420_v11  ;;  %v428_v34 = vmul.f32 0.5, %v427_v12  ;;  %vm352_vm1 = vweird.f32 %v598_v21 }
 0x146   :  { %v485_v22 = vmul.f32 %v424_v19, %v724_v57  ;;  %v378_v23 = vmul.f32 0.5, %v377_v20  ;;  %v347_v26 = vmul.f32 %v598_v21, %v346_v25  ;;  %vm353_vm3 = vmor %vm351_vm2, %vm352_vm1  ;;  %vm461_vm5 = vweird.f32 %v832_v35 }
 0x147   :  { %500 = vst [vmem:[%s897_s2 + $0x48] sm:$0xff] %v484_v18  ;;  %v429_v13 = vsub.f32 1.5, %v428_v34  ;;  %vm471_vm8 = vweird.f32 %v838_v51  ;;  %vm391_vm11 = vweird.f32 %v844_v17 }
 0x148   :  { %501 = vst [vmem:[%s897_s2 + $0x50] sm:$0xff] %v485_v22  ;;  %v379_v57 = vsub.f32 1.5, %v378_v23  ;;  %v600_v28 = vpop.eup %599  ;;  %v348_v42 = vmul.f32 0.5, %v347_v26 }
 0x149   :  { %v430_v55 = vmul.f32 %v594_v62, %v429_v13  ;;  %v294_v27 = vpop.xlane.xlu1 %293  ;;  %v456_v31 = vmul.f32 %v600_v28, %v832_v35  ;;  %v602_v32 = vpop.eup %601  ;;  %vm462_vm4 = vweird.f32 %v600_v28 }
 0x14a   :  { %v312_v24 = vmax.f32 %v294_v27, 1e-24  ;;  %v380_v30 = vmul.f32 %v596_v7, %v379_v57  ;;  %v349_v37 = vsub.f32 1.5, %v348_v42  ;;  %v466_v39 = vmul.f32 %v602_v32, %v838_v51  ;;  %v604_v44 = vpop.eup %603  ;;  %vm463_vm7 = vmor %vm461_vm5, %vm462_vm4 }
 0x14b   :  { %v434_v29 = vsel %vm433_vm14, %v594_v62, %v430_v55  ;;  %v457_v38 = vmul.f32 %v600_v28, %v456_v31  ;;  %v386_v49 = vmul.f32 %v604_v44, %v844_v17  ;;  %vm472_vm6 = vweird.f32 %v602_v32 }
 0x14c   :  { %v486_v40 = vmul.f32 %v434_v29, %v734_v2  ;;  %605 = vrsqrt.f32 %v312_v24  ;;  %v384_v36 = vsel %vm383_vm0, %v596_v7, %v380_v30  ;;  %v350_v45 = vmul.f32 %v598_v21, %v349_v37  ;;  %vm473_vm10 = vmor %vm471_vm8, %vm472_vm6 }
 0x14d   :  { %v481_v33 = vmul.f32 %v384_v36, %v730_v63  ;;  %v458_v48 = vmul.f32 0.5, %v457_v38  ;;  %v467_v2 = vmul.f32 %v602_v32, %v466_v39  ;;  %v387_v54 = vmul.f32 %v604_v44, %v386_v49 }
 0x14e   :  { %502 = vst [vmem:[%s897_s2 + $0x58] sm:$0xff] %v486_v40  ;;  %v354_v52 = vsel %vm353_vm3, %v598_v21, %v350_v45  ;;  %vm392_vm9 = vweird.f32 %v604_v44  ;;  %vm451_vm14 = vweird.f32 %v312_v24 }
 0x14f   :  { %497 = vst [vmem:[%s897_s2 + $0x30] sm:$0xff] %v481_v33  ;;  %v459_v43 = vsub.f32 1.5, %v458_v48  ;;  %v468_v53 = vmul.f32 0.5, %v467_v2  ;;  %v478_v63 = vmul.f32 %v354_v52, %v732_v1  ;;  %v388_v59 = vmul.f32 0.5, %v387_v54  ;;  %vm393_vm12 = vmor %vm391_vm11, %vm392_vm9 }
 0x151   :  { %v460_v41 = vmul.f32 %v600_v28, %v459_v43  ;;  %v469_v58 = vsub.f32 1.5, %v468_v53  ;;  %494 = vst [vmem:[%s897_s2 + $0x18] sm:$0xff] %v478_v63  ;;  %v389_v62 = vsub.f32 1.5, %v388_v59 }
 0x152   :  { %v606_v56 = vpop.eup %605 }
 0x153   :  { %v446_v60 = vmul.f32 %v606_v56, %v312_v24  ;;  %v464_v50 = vsel %vm463_vm7, %v600_v28, %v460_v41  ;;  %v470_v61 = vmul.f32 %v602_v32, %v469_v58  ;;  %v390_v47 = vmul.f32 %v604_v44, %v389_v62 }
 0x154   :  { %v489_v1 = vmul.f32 %v464_v50, %v740_v6  ;;  %vm452_vm13 = vweird.f32 %v606_v56 }
 0x155   :  { %v447_v46 = vmul.f32 %v606_v56, %v446_v60  ;;  %v474_v0 = vsel %vm473_vm10, %v602_v32, %v470_v61  ;;  %v394_v35 = vsel %vm393_vm12, %v604_v44, %v390_v47  ;;  %vm453_vm15 = vmor %vm451_vm14, %vm452_vm13 }
 0x156   :  { %505 = vst [vmem:[%s897_s2 + $0x70] sm:$0xff] %v489_v1  ;;  %v490_v4 = vmul.f32 %v474_v0, %v744_v9  ;;  %v482_v6 = vmul.f32 %v394_v35, %v746_v10 }
 0x157   :  { %v448_v3 = vmul.f32 0.5, %v447_v46 }
 0x158   :  { %506 = vst [vmem:[%s897_s2 + $0x78] sm:$0xff] %v490_v4 }
 0x159   :  { %v449_v5 = vsub.f32 1.5, %v448_v3  ;;  %498 = vst [vmem:[%s897_s2 + $0x38] sm:$0xff] %v482_v6 }
 0x15b   :  { %v450_v7 = vmul.f32 %v606_v56, %v449_v5 }
 0x15d   :  { %v454_v8 = vsel %vm453_vm15, %v606_v56, %v450_v7 }
 0x15e   :  { %v488_v9 = vmul.f32 %v454_v8, %v754_v14 }
 0x160   :  { %504 = vst [vmem:[%s897_s2 + $0x68] sm:$0xff] %v488_v9 }

// kernel: agea_forward.15
= control target key start
LH: loop header
LB: loop body
LE: loop exit
PB: predicated region body
PF: predicated region fallthrough
CT: control target
= control target key end

     0   :  { %s470_s1 = inlined_call_operand.vmem [shape: f32[128,128], index: 1, kind: input, shape index: {}]   ;;  %s471_s0 = inlined_call_operand.vmem [shape: bf16[128,128], index: 0, kind: input, shape index: {}]   ;;  %s472_s2 = inlined_call_operand.vmem [shape: f32[128,128], index: 2, kind: output, shape index: {}]  }
   0x1   :  { %v77_v0 = vld [vmem:[%s470_s1 + $0x70] sm:$0xff]  ;;  %v78_v1 = vld [vmem:[%s470_s1 + $0x78] sm:$0xff]  ;;  %v75_v2 = vld [vmem:[%s470_s1 + $0x60] sm:$0xff] }
   0x2   :  { %v86_v3 = vpack.c.bf16 %v78_v1, %v77_v0  ;;  %v76_v4 = vld [vmem:[%s470_s1 + $0x68] sm:$0xff]  ;;  %v73_v6 = vld [vmem:[%s470_s1 + $0x50] sm:$0xff]  ;;  %v74_v7 = vld [vmem:[%s470_s1 + $0x58] sm:$0xff] }
   0x3   :  { %v85_v5 = vpack.c.bf16 %v76_v4, %v75_v2  ;;  %v84_v8 = vpack.c.bf16 %v74_v7, %v73_v6  ;;  %v71_v9 = vld [vmem:[%s470_s1 + $0x40] sm:$0xff]  ;;  %v72_v10 = vld [vmem:[%s470_s1 + $0x48] sm:$0xff]  ;;  %v69_v12 = vld [vmem:[%s470_s1 + $0x30] sm:$0xff] }
   0x4   :  { %135 = vmatpush.bf16.msra.mxu0 %v86_v3  ;;  %311 = vmatpush.bf16.msra.mxu1 %v86_v3  ;;  %v83_v11 = vpack.c.bf16 %v72_v10, %v71_v9  ;;  %v70_v13 = vld [vmem:[%s470_s1 + $0x38] sm:$0xff]  ;;  %v67_v15 = vld [vmem:[%s470_s1 + $0x20] sm:$0xff]  ;;  %v68_v16 = vld [vmem:[%s470_s1 + $0x28] sm:$0xff] }
   0x5   :  { %312 = vmatpush.bf16.msra.mxu2 %v86_v3  ;;  %313 = vmatpush.bf16.msra.mxu3 %v86_v3  ;;  %v82_v14 = vpack.c.bf16 %v70_v13, %v69_v12  ;;  %v81_v17 = vpack.c.bf16 %v68_v16, %v67_v15  ;;  %v65_v18 = vld [vmem:[%s470_s1 + $0x10] sm:$0xff]  ;;  %v66_v19 = vld [vmem:[%s470_s1 + $0x18] sm:$0xff]  ;;  %v63_v21 = vld [vmem:[%s470_s1] sm:$0xff] }
   0x6   :  { %v80_v20 = vpack.c.bf16 %v66_v19, %v65_v18  ;;  %v64_v22 = vld [vmem:[%s470_s1 + $0x8] sm:$0xff]  ;;  %v303_v24 = vld [vmem:[%s471_s0] sm:$0xff]  ;;  %v305_v25 = vld [vmem:[%s471_s0 + $0x10] sm:$0xff] }
   0x7   :  { %v79_v23 = vpack.c.bf16 %v64_v22, %v63_v21  ;;  %v307_v26 = vld [vmem:[%s471_s0 + $0x20] sm:$0xff]  ;;  %v309_v27 = vld [vmem:[%s471_s0 + $0x30] sm:$0xff]  ;;  %v304_v28 = vld [vmem:[%s471_s0 + $0x8] sm:$0xff] }
   0x8   :  { %136 = vmatpush.bf16.msra.mxu0 %v85_v5  ;;  %314 = vmatpush.bf16.msra.mxu1 %v85_v5  ;;  %v306_v29 = vld [vmem:[%s471_s0 + $0x18] sm:$0xff]  ;;  %v308_v30 = vld [vmem:[%s471_s0 + $0x28] sm:$0xff] }
   0x9   :  { %315 = vmatpush.bf16.msra.mxu2 %v85_v5  ;;  %316 = vmatpush.bf16.msra.mxu3 %v85_v5  ;;  %v310_v31 = vld [vmem:[%s471_s0 + $0x38] sm:$0xff] }
   0xc   :  { %137 = vmatpush.bf16.msra.mxu0 %v84_v8  ;;  %317 = vmatpush.bf16.msra.mxu1 %v84_v8 }
   0xd   :  { %318 = vmatpush.bf16.msra.mxu2 %v84_v8  ;;  %319 = vmatpush.bf16.msra.mxu3 %v84_v8 }
  0x10   :  { %138 = vmatpush.bf16.msra.mxu0 %v83_v11  ;;  %320 = vmatpush.bf16.msra.mxu1 %v83_v11 }
  0x11   :  { %321 = vmatpush.bf16.msra.mxu2 %v83_v11  ;;  %322 = vmatpush.bf16.msra.mxu3 %v83_v11 }
  0x14   :  { %139 = vmatpush.bf16.msra.mxu0 %v82_v14  ;;  %323 = vmatpush.bf16.msra.mxu1 %v82_v14 }
  0x15   :  { %324 = vmatpush.bf16.msra.mxu2 %v82_v14  ;;  %325 = vmatpush.bf16.msra.mxu3 %v82_v14 }
  0x18   :  { %140 = vmatpush.bf16.msra.mxu0 %v81_v17  ;;  %326 = vmatpush.bf16.msra.mxu1 %v81_v17 }
  0x19   :  { %327 = vmatpush.bf16.msra.mxu2 %v81_v17  ;;  %328 = vmatpush.bf16.msra.mxu3 %v81_v17 }
  0x1c   :  { %141 = vmatpush.bf16.msra.mxu0 %v80_v20  ;;  %329 = vmatpush.bf16.msra.mxu1 %v80_v20 }
  0x1d   :  { %330 = vmatpush.bf16.msra.mxu2 %v80_v20  ;;  %331 = vmatpush.bf16.msra.mxu3 %v80_v20 }
  0x20   :  { %142 = vmatpush.bf16.msra.mxu0 %v79_v23  ;;  %332 = vmatpush.bf16.msra.mxu1 %v79_v23 }
  0x21   :  { %333 = vmatpush.bf16.msra.mxu2 %v79_v23  ;;  %334 = vmatpush.bf16.msra.mxu3 %v79_v23 }
  0x23   :  { %143 = vmatmul.bf16.vlgmr.msra.gmra.mxu0 %v303_v24  ;;  %153 = vmatmul.bf16.vlgmr.msra.gmra.mxu1 %v305_v25 }
  0x24   :  { %163 = vmatmul.bf16.vlgmr.msra.gmra.mxu2 %v307_v26  ;;  %173 = vmatmul.bf16.vlgmr.msra.gmra.mxu3 %v309_v27 }
  0x33   :  { %148 = vmatmul.bf16.gmra.mxu0 %v304_v28  ;;  %158 = vmatmul.bf16.gmra.mxu1 %v306_v29 }
  0x34   :  { %168 = vmatmul.bf16.gmra.mxu2 %v308_v30  ;;  %178 = vmatmul.bf16.gmra.mxu3 %v310_v31 }
  0xa0   :  { %v144_v32 = vpop.f32.mrf.mxu0  ;;  %v154_v33 = vpop.f32.mrf.mxu1 }
  0xa1   :  { %v235_v34 = vmax.f32 %v144_v32, 0.0  ;;  %v239_v35 = vmax.f32 %v154_v33, 0.0 }
  0xa3   :  { %251 = vst [vmem:[%s472_s2] sm:$0xff] %v235_v34 }
  0xa4   :  { %255 = vst [vmem:[%s472_s2 + $0x20] sm:$0xff] %v239_v35 }
  0xa7   :  { %v164_v36 = vpop.f32.mrf.mxu2  ;;  %v174_v37 = vpop.f32.mrf.mxu3 }
  0xa8   :  { %v243_v38 = vmax.f32 %v164_v36, 0.0  ;;  %v247_v39 = vmax.f32 %v174_v37, 0.0  ;;  %v146_v40 = vpop.f32.mrf.mxu0  ;;  %v156_v41 = vpop.f32.mrf.mxu1 }
  0xa9   :  { %v236_v42 = vmax.f32 %v146_v40, 0.0  ;;  %v240_v43 = vmax.f32 %v156_v41, 0.0 }
  0xaa   :  { %259 = vst [vmem:[%s472_s2 + $0x40] sm:$0xff] %v243_v38 }
  0xab   :  { %263 = vst [vmem:[%s472_s2 + $0x60] sm:$0xff] %v247_v39 }
  0xac   :  { %252 = vst [vmem:[%s472_s2 + $0x8] sm:$0xff] %v236_v42 }
  0xad   :  { %256 = vst [vmem:[%s472_s2 + $0x28] sm:$0xff] %v240_v43 }
  0xaf   :  { %v166_v44 = vpop.f32.mrf.mxu2  ;;  %v176_v45 = vpop.f32.mrf.mxu3 }
  0xb0   :  { %v244_v46 = vmax.f32 %v166_v44, 0.0  ;;  %v248_v47 = vmax.f32 %v176_v45, 0.0  ;;  %v149_v48 = vpop.f32.mrf.mxu0  ;;  %v159_v49 = vpop.f32.mrf.mxu1 }
  0xb1   :  { %v237_v50 = vmax.f32 %v149_v48, 0.0  ;;  %v241_v51 = vmax.f32 %v159_v49, 0.0 }
  0xb2   :  { %260 = vst [vmem:[%s472_s2 + $0x48] sm:$0xff] %v244_v46 }
  0xb3   :  { %264 = vst [vmem:[%s472_s2 + $0x68] sm:$0xff] %v248_v47 }
  0xb4   :  { %253 = vst [vmem:[%s472_s2 + $0x10] sm:$0xff] %v237_v50 }
  0xb5   :  { %257 = vst [vmem:[%s472_s2 + $0x30] sm:$0xff] %v241_v51 }
  0xb7   :  { %v169_v52 = vpop.f32.mrf.mxu2  ;;  %v179_v53 = vpop.f32.mrf.mxu3 }
  0xb8   :  { %v245_v54 = vmax.f32 %v169_v52, 0.0  ;;  %v249_v55 = vmax.f32 %v179_v53, 0.0  ;;  %v151_v56 = vpop.f32.mrf.mxu0  ;;  %v161_v57 = vpop.f32.mrf.mxu1 }
  0xb9   :  { %v238_v58 = vmax.f32 %v151_v56, 0.0  ;;  %v242_v59 = vmax.f32 %v161_v57, 0.0 }
  0xba   :  { %261 = vst [vmem:[%s472_s2 + $0x50] sm:$0xff] %v245_v54 }
  0xbb   :  { %265 = vst [vmem:[%s472_s2 + $0x70] sm:$0xff] %v249_v55 }
  0xbc   :  { %254 = vst [vmem:[%s472_s2 + $0x18] sm:$0xff] %v238_v58 }
  0xbd   :  { %258 = vst [vmem:[%s472_s2 + $0x38] sm:$0xff] %v242_v59 }
  0xbf   :  { %v171_v60 = vpop.f32.mrf.mxu2  ;;  %v181_v61 = vpop.f32.mrf.mxu3 }
  0xc0   :  { %v246_v62 = vmax.f32 %v171_v60, 0.0  ;;  %v250_v63 = vmax.f32 %v181_v61, 0.0 }
  0xc2   :  { %262 = vst [vmem:[%s472_s2 + $0x58] sm:$0xff] %v246_v62 }
  0xc3   :  { %266 = vst [vmem:[%s472_s2 + $0x78] sm:$0xff] %v250_v63 }

// kernel: agea_forward.19
= control target key start
LH: loop header
LB: loop body
LE: loop exit
PB: predicated region body
PF: predicated region fallthrough
CT: control target
= control target key end

     0   :  { %s1649_s0 = inlined_call_operand.vmem [shape: f32[128,128], index: 0, kind: input, shape index: {}]   ;;  %s1650_s1 = inlined_call_operand.vmem [shape: f32[128,128], index: 1, kind: input, shape index: {}]   ;;  %s1651_s2 = inlined_call_operand.vmem [shape: f32[128,128], index: 2, kind: input, shape index: {}]   ;;  %s1652_s3 = inlined_call_operand.vmem [shape: f32[128,128], index: 3, kind: input, shape index: {}]   ;;  %s1653_s4 = inlined_call_operand.vmem [shape: f32[128,512], index: 4, kind: output, shape index: {}]  }
   0x1   :  { %v698_v0 = vld [vmem:[%s1649_s0 + $0x20] sm:$0xff]  ;;  %v703_v1 = vld [vmem:[%s1649_s0 + $0x10] sm:$0xff]  ;;  %v719_v6 = vld [vmem:[%s1649_s0 + $0x28] sm:$0xff] }
   0x2   :  { %v708_v2 = vld [vmem:[%s1649_s0] sm:$0xff]  ;;  %v85_v3 = vmul.f32 %v698_v0, %v698_v0  ;;  %v83_v4 = vmul.f32 %v703_v1, %v703_v1  ;;  %v724_v7 = vld [vmem:[%s1649_s0 + $0x18] sm:$0xff]  ;;  %v729_v8 = vld [vmem:[%s1649_s0 + $0x8] sm:$0xff]  ;;  %v86_v9 = vmul.f32 %v719_v6, %v719_v6 }
   0x3   :  { %v81_v5 = vmul.f32 %v708_v2, %v708_v2  ;;  %v84_v10 = vmul.f32 %v724_v7, %v724_v7  ;;  %v82_v11 = vmul.f32 %v729_v8, %v729_v8  ;;  %v740_v12 = vld [vmem:[%s1649_s0 + $0x40] sm:$0xff]  ;;  %v745_v13 = vld [vmem:[%s1649_s0 + $0x38] sm:$0xff]  ;;  %v750_v14 = vld [vmem:[%s1649_s0 + $0x30] sm:$0xff] }
   0x4   :  { %105 = vadd.xlane.f32.xlu2 %v85_v3  ;;  %101 = vadd.xlane.f32.xlu1 %v83_v4  ;;  %1687 = vst [vmem:[#allocation2_spill] sm:$0xff] %v740_v12  ;;  %v89_v15 = vmul.f32 %v740_v12, %v740_v12  ;;  %v88_v16 = vmul.f32 %v745_v13, %v745_v13  ;;  %v761_v18 = vld [vmem:[%s1649_s0 + $0x58] sm:$0xff]  ;;  %v27_v19 = vld [vmem:[%s1649_s0 + $0x50] sm:$0xff]  ;;  %v26_v20 = vld [vmem:[%s1649_s0 + $0x48] sm:$0xff] }
   0x5   :  { %97 = vadd.xlane.f32.xlu0 %v81_v5  ;;  %1688 = vst [vmem:[#allocation3_spill] sm:$0xff] %v745_v13  ;;  %v87_v17 = vmul.f32 %v750_v14, %v750_v14  ;;  %v92_v21 = vmul.f32 %v761_v18, %v761_v18  ;;  %v91_v22 = vmul.f32 %v27_v19, %v27_v19  ;;  %v31_v24 = vld [vmem:[%s1649_s0 + $0x70] sm:$0xff]  ;;  %v30_v25 = vld [vmem:[%s1649_s0 + $0x68] sm:$0xff]  ;;  %v29_v26 = vld [vmem:[%s1649_s0 + $0x60] sm:$0xff] }
   0x6   :  { %1689 = vst [vmem:[#allocation4_spill] sm:$0xff] %v750_v14  ;;  %v90_v23 = vmul.f32 %v26_v20, %v26_v20  ;;  %v95_v27 = vmul.f32 %v31_v24, %v31_v24  ;;  %v94_v28 = vmul.f32 %v30_v25, %v30_v25  ;;  %v93_v29 = vmul.f32 %v29_v26, %v29_v26  ;;  %v783_v30 = vld [vmem:[%s1650_s1 + $0x8] sm:$0xff]  ;;  %v788_v31 = vld [vmem:[%s1650_s1] sm:$0xff]  ;;  %v32_v32 = vld [vmem:[%s1649_s0 + $0x78] sm:$0xff] }
   0x7   :  { %1690 = vst [vmem:[#allocation5_spill] sm:$0xff] %v761_v18  ;;  %v130_v33 = vmul.f32 %v783_v30, %v783_v30  ;;  %v129_v34 = vmul.f32 %v788_v31, %v788_v31  ;;  %v96_v35 = vmul.f32 %v32_v32, %v32_v32  ;;  %v800_v36 = vld [vmem:[%s1650_s1 + $0x20] sm:$0xff]  ;;  %v805_v37 = vld [vmem:[%s1650_s1 + $0x18] sm:$0xff]  ;;  %v810_v38 = vld [vmem:[%s1650_s1 + $0x10] sm:$0xff] }
   0x8   :  { %v133_v39 = vmul.f32 %v800_v36, %v800_v36  ;;  %v132_v40 = vmul.f32 %v805_v37, %v805_v37  ;;  %v131_v41 = vmul.f32 %v810_v38, %v810_v38  ;;  %v821_v42 = vld [vmem:[%s1650_s1 + $0x38] sm:$0xff]  ;;  %v826_v43 = vld [vmem:[%s1650_s1 + $0x30] sm:$0xff]  ;;  %v831_v44 = vld [vmem:[%s1650_s1 + $0x28] sm:$0xff] }
   0x9   :  { %1691 = vst [vmem:[#allocation6_spill] sm:$0xff] %v821_v42  ;;  %v136_v45 = vmul.f32 %v821_v42, %v821_v42  ;;  %v135_v46 = vmul.f32 %v826_v43, %v826_v43  ;;  %v134_v47 = vmul.f32 %v831_v44, %v831_v44  ;;  %v842_v48 = vld [vmem:[%s1650_s1 + $0x50] sm:$0xff]  ;;  %v847_v49 = vld [vmem:[%s1650_s1 + $0x48] sm:$0xff]  ;;  %v852_v50 = vld [vmem:[%s1650_s1 + $0x40] sm:$0xff] }
   0xa   :  { %1692 = vst [vmem:[#allocation7_spill] sm:$0xff] %v826_v43  ;;  %v139_v51 = vmul.f32 %v842_v48, %v842_v48  ;;  %v138_v52 = vmul.f32 %v847_v49, %v847_v49  ;;  %v137_v53 = vmul.f32 %v852_v50, %v852_v50  ;;  %v46_v54 = vld [vmem:[%s1650_s1 + $0x68] sm:$0xff]  ;;  %v45_v55 = vld [vmem:[%s1650_s1 + $0x60] sm:$0xff]  ;;  %v869_v56 = vld [vmem:[%s1650_s1 + $0x58] sm:$0xff] }
   0xb   :  { %1693 = vst [vmem:[#allocation8_spill] sm:$0xff] %v842_v48  ;;  %v142_v57 = vmul.f32 %v46_v54, %v46_v54  ;;  %v141_v58 = vmul.f32 %v45_v55, %v45_v55  ;;  %v140_v59 = vmul.f32 %v869_v56, %v869_v56  ;;  %v876_v60 = vld [vmem:[%s1651_s2] sm:$0xff]  ;;  %v48_v61 = vld [vmem:[%s1650_s1 + $0x78] sm:$0xff]  ;;  %v884_v62 = vld [vmem:[%s1650_s1 + $0x70] sm:$0xff] }
   0xc   :  { %107 = vadd.xlane.f32.xlu2 %v86_v9  ;;  %103 = vadd.xlane.f32.xlu1 %v84_v10  ;;  %1694 = vst [vmem:[#allocation9_spill] sm:$0xff] %v847_v49  ;;  %v193_v63 = vmul.f32 %v876_v60, %v876_v60  ;;  %v144_v3 = vmul.f32 %v48_v61, %v48_v61  ;;  %v893_v5 = vld [vmem:[%s1651_s2 + $0x18] sm:$0xff]  ;;  %v898_v9 = vld [vmem:[%s1651_s2 + $0x10] sm:$0xff]  ;;  %v903_v10 = vld [vmem:[%s1651_s2 + $0x8] sm:$0xff] }
   0xd   :  { %99 = vadd.xlane.f32.xlu0 %v82_v11  ;;  %1695 = vst [vmem:[#allocation10_spill] sm:$0xff] %v852_v50  ;;  %v143_v4 = vmul.f32 %v884_v62, %v884_v62  ;;  %v196_v11 = vmul.f32 %v893_v5, %v893_v5  ;;  %v919_v19 = vld [vmem:[%s1651_s2 + $0x28] sm:$0xff]  ;;  %v924_v20 = vld [vmem:[%s1651_s2 + $0x20] sm:$0xff]  ;;  %v945_v26 = vld [vmem:[%s1651_s2 + $0x38] sm:$0xff] }
   0xe   :  { %1696 = vst [vmem:[#allocation11_spill] sm:$0xff] %v869_v56  ;;  %v935_v24 = vld [vmem:[%s1651_s2 + $0x48] sm:$0xff]  ;;  %v940_v25 = vld [vmem:[%s1651_s2 + $0x40] sm:$0xff]  ;;  %v1111_v56 = vld [vmem:[%s1652_s3 + $0x78] sm:$0xff] }
   0xf   :  { %1697 = vst [vmem:[#allocation12_spill] sm:$0xff] %v884_v62  ;;  %v956_v32 = vld [vmem:[%s1651_s2 + $0x60] sm:$0xff]  ;;  %v1095_v49 = vld [vmem:[%s1652_s3 + $0x68] sm:$0xff] }
  0x10   :  { %1698 = vst [vmem:[#allocation13_spill] sm:$0xff] %v893_v5 }
  0x11   :  { %1700 = vst [vmem:[#allocation15_spill] sm:$0xff] %v935_v24 }
  0x12   :  { %1701 = vst [vmem:[#allocation16_spill] sm:$0xff] %v940_v25 }
  0x13   :  { %1702 = vst [vmem:[#allocation17_spill] sm:$0xff] %v945_v26 }
  0x14   :  { %113 = vadd.xlane.f32.xlu2 %v89_v15  ;;  %111 = vadd.xlane.f32.xlu1 %v88_v16  ;;  %v195_v15 = vmul.f32 %v898_v9, %v898_v9  ;;  %v194_v16 = vmul.f32 %v903_v10, %v903_v10  ;;  %1703 = vst [vmem:[#allocation18_spill] sm:$0xff] %v956_v32 }
  0x15   :  { %109 = vadd.xlane.f32.xlu0 %v87_v17  ;;  %v914_v17 = vld [vmem:[%s1651_s2 + $0x30] sm:$0xff]  ;;  %1717 = vst [vmem:[#allocation32_spill] sm:$0xff] %v1095_v49 }
  0x16   :  { %1699 = vst [vmem:[#allocation14_spill] sm:$0xff] %v914_v17 }
  0x17   :  { %1719 = vst [vmem:[#allocation34_spill] sm:$0xff] %v1111_v56 }
  0x1c   :  { %119 = vadd.xlane.f32.xlu2 %v92_v21  ;;  %117 = vadd.xlane.f32.xlu1 %v91_v22  ;;  %v199_v21 = vmul.f32 %v914_v17, %v914_v17  ;;  %v198_v22 = vmul.f32 %v919_v19, %v919_v19 }
  0x1d   :  { %115 = vadd.xlane.f32.xlu0 %v90_v23  ;;  %v197_v23 = vmul.f32 %v924_v20, %v924_v20 }
  0x24   :  { %125 = vadd.xlane.f32.xlu2 %v95_v27  ;;  %123 = vadd.xlane.f32.xlu1 %v94_v28  ;;  %v202_v27 = vmul.f32 %v935_v24, %v935_v24  ;;  %v201_v28 = vmul.f32 %v940_v25, %v940_v25  ;;  %v1090_v24 = vld [vmem:[%s1652_s3 + $0x70] sm:$0xff] }
  0x25   :  { %121 = vadd.xlane.f32.xlu0 %v93_v29  ;;  %v200_v29 = vmul.f32 %v945_v26, %v945_v26  ;;  %1716 = vst [vmem:[#allocation31_spill] sm:$0xff] %v1090_v24  ;;  %v271_v48 = vmul.f32 %v1090_v24, %v1090_v24 }
  0x2c   :  { %147 = vadd.xlane.f32.xlu2 %v130_v33  ;;  %145 = vadd.xlane.f32.xlu1 %v129_v34  ;;  %v961_v33 = vld [vmem:[%s1651_s2 + $0x58] sm:$0xff]  ;;  %v966_v34 = vld [vmem:[%s1651_s2 + $0x50] sm:$0xff] }
  0x2d   :  { %127 = vadd.xlane.f32.xlu0 %v96_v35  ;;  %1704 = vst [vmem:[#allocation19_spill] sm:$0xff] %v961_v33  ;;  %v205_v35 = vmul.f32 %v956_v32, %v956_v32  ;;  %v1079_v32 = vld [vmem:[%s1652_s3 + $0x48] sm:$0xff] }
  0x2e   :  { %1705 = vst [vmem:[#allocation20_spill] sm:$0xff] %v966_v34  ;;  %v266_v62 = vmul.f32 %v1079_v32, %v1079_v32 }
  0x2f   :  { %1715 = vst [vmem:[#allocation30_spill] sm:$0xff] %v1079_v32 }
  0x34   :  { %153 = vadd.xlane.f32.xlu2 %v133_v39  ;;  %151 = vadd.xlane.f32.xlu1 %v132_v40  ;;  %v204_v39 = vmul.f32 %v961_v33, %v961_v33  ;;  %v203_v40 = vmul.f32 %v966_v34, %v966_v34 }
  0x35   :  { %149 = vadd.xlane.f32.xlu0 %v131_v41  ;;  %v977_v41 = vld [vmem:[%s1651_s2 + $0x78] sm:$0xff] }
  0x36   :  { %1706 = vst [vmem:[#allocation21_spill] sm:$0xff] %v977_v41 }
  0x3c   :  { %159 = vadd.xlane.f32.xlu2 %v136_v45  ;;  %157 = vadd.xlane.f32.xlu1 %v135_v46  ;;  %v982_v45 = vld [vmem:[%s1651_s2 + $0x70] sm:$0xff]  ;;  %v987_v46 = vld [vmem:[%s1651_s2 + $0x68] sm:$0xff] }
  0x3d   :  { %155 = vadd.xlane.f32.xlu0 %v134_v47  ;;  %1707 = vst [vmem:[#allocation22_spill] sm:$0xff] %v982_v45  ;;  %v207_v54 = vmul.f32 %v982_v45, %v982_v45  ;;  %v206_v55 = vmul.f32 %v987_v46, %v987_v46 }
  0x3e   :  { %1708 = vst [vmem:[#allocation23_spill] sm:$0xff] %v987_v46 }
  0x44   :  { %165 = vadd.xlane.f32.xlu2 %v139_v51  ;;  %163 = vadd.xlane.f32.xlu1 %v138_v52 }
  0x45   :  { %161 = vadd.xlane.f32.xlu0 %v137_v53  ;;  %v208_v53 = vmul.f32 %v977_v41, %v977_v41  ;;  %v1074_v41 = vld [vmem:[%s1652_s3 + $0x50] sm:$0xff] }
  0x46   :  { %1714 = vst [vmem:[#allocation29_spill] sm:$0xff] %v1074_v41 }
  0x4c   :  { %171 = vadd.xlane.f32.xlu2 %v142_v57  ;;  %169 = vadd.xlane.f32.xlu1 %v141_v58  ;;  %v1002_v57 = vld [vmem:[%s1652_s3 + $0x10] sm:$0xff]  ;;  %v1007_v58 = vld [vmem:[%s1652_s3 + $0x8] sm:$0xff] }
  0x4d   :  { %167 = vadd.xlane.f32.xlu0 %v140_v59  ;;  %v1012_v59 = vld [vmem:[%s1652_s3] sm:$0xff] }
  0x54   :  { %209 = vadd.xlane.f32.xlu2 %v193_v63  ;;  %175 = vadd.xlane.f32.xlu1 %v144_v3 }
  0x55   :  { %173 = vadd.xlane.f32.xlu0 %v143_v4  ;;  %v259_v4 = vmul.f32 %v1002_v57, %v1002_v57 }
  0x5c   :  { %215 = vadd.xlane.f32.xlu2 %v196_v11  ;;  %213 = vadd.xlane.f32.xlu1 %v195_v15  ;;  %v258_v11 = vmul.f32 %v1007_v58, %v1007_v58  ;;  %v257_v15 = vmul.f32 %v1012_v59, %v1012_v59 }
  0x5d   :  { %211 = vadd.xlane.f32.xlu0 %v194_v16  ;;  %v1025_v16 = vld [vmem:[%s1652_s3 + $0x28] sm:$0xff] }
  0x64   :  { %221 = vadd.xlane.f32.xlu2 %v199_v21  ;;  %219 = vadd.xlane.f32.xlu1 %v198_v22  ;;  %v1030_v21 = vld [vmem:[%s1652_s3 + $0x20] sm:$0xff]  ;;  %v1035_v22 = vld [vmem:[%s1652_s3 + $0x18] sm:$0xff] }
  0x65   :  { %217 = vadd.xlane.f32.xlu0 %v197_v23  ;;  %1709 = vst [vmem:[#allocation24_spill] sm:$0xff] %v1035_v22 }
  0x6c   :  { %227 = vadd.xlane.f32.xlu2 %v202_v27  ;;  %225 = vadd.xlane.f32.xlu1 %v201_v28 }
  0x6d   :  { %223 = vadd.xlane.f32.xlu0 %v200_v29  ;;  %v262_v29 = vmul.f32 %v1025_v16, %v1025_v16 }
  0x74   :  { %233 = vadd.xlane.f32.xlu2 %v205_v35  ;;  %231 = vadd.xlane.f32.xlu1 %v204_v39  ;;  %v261_v35 = vmul.f32 %v1030_v21, %v1030_v21  ;;  %v260_v39 = vmul.f32 %v1035_v22, %v1035_v22 }
  0x75   :  { %229 = vadd.xlane.f32.xlu0 %v203_v40  ;;  %v1048_v40 = vld [vmem:[%s1652_s3 + $0x40] sm:$0xff] }
  0x76   :  { %1710 = vst [vmem:[#allocation25_spill] sm:$0xff] %v1048_v40 }
  0x77   :  { %v989_v47 = vpop.xlane.xlu2 %105  ;;  %v991_v51 = vpop.xlane.xlu1 %101 }
  0x78   :  { %v98_v52 = vpop.xlane.xlu0 %97 }
  0x7c   :  { %239 = vadd.xlane.f32.xlu2 %v208_v53  ;;  %237 = vadd.xlane.f32.xlu1 %v207_v54  ;;  %v1053_v53 = vld [vmem:[%s1652_s3 + $0x38] sm:$0xff]  ;;  %v1058_v54 = vld [vmem:[%s1652_s3 + $0x30] sm:$0xff] }
  0x7d   :  { %235 = vadd.xlane.f32.xlu0 %v206_v55  ;;  %1711 = vst [vmem:[#allocation26_spill] sm:$0xff] %v1053_v53 }
  0x7e   :  { %1712 = vst [vmem:[#allocation27_spill] sm:$0xff] %v1058_v54 }
  0x7f   :  { %v1014_v61 = vpop.xlane.xlu2 %107  ;;  %v104_v63 = vpop.xlane.xlu1 %103 }
  0x80   :  { %v100_v3 = vpop.xlane.xlu0 %99 }
  0x84   :  { %277 = vadd.xlane.f32.xlu2 %v259_v4  ;;  %275 = vadd.xlane.f32.xlu1 %v258_v11 }
  0x85   :  { %273 = vadd.xlane.f32.xlu0 %v257_v15  ;;  %v265_v15 = vmul.f32 %v1048_v40, %v1048_v40 }
  0x87   :  { %v1037_v23 = vpop.xlane.xlu2 %113  ;;  %v112_v27 = vpop.xlane.xlu1 %111 }
  0x88   :  { %v110_v28 = vpop.xlane.xlu0 %109 }
  0x8c   :  { %283 = vadd.xlane.f32.xlu2 %v262_v29  ;;  %281 = vadd.xlane.f32.xlu1 %v261_v35  ;;  %v264_v29 = vmul.f32 %v1053_v53, %v1053_v53  ;;  %v263_v35 = vmul.f32 %v1058_v54, %v1058_v54 }
  0x8d   :  { %279 = vadd.xlane.f32.xlu0 %v260_v39  ;;  %v1069_v39 = vld [vmem:[%s1652_s3 + $0x58] sm:$0xff] }
  0x8e   :  { %1713 = vst [vmem:[#allocation28_spill] sm:$0xff] %v1069_v39 }
  0x8f   :  { %v120_v55 = vpop.xlane.xlu2 %119  ;;  %v118_v4 = vpop.xlane.xlu1 %117 }
  0x90   :  { %v116_v11 = vpop.xlane.xlu0 %115 }
  0x94   :  { %289 = vadd.xlane.f32.xlu2 %v265_v15  ;;  %287 = vadd.xlane.f32.xlu1 %v264_v29  ;;  %v268_v29 = vmul.f32 %v1069_v39, %v1069_v39  ;;  %v270_v39 = vmul.f32 %v1095_v49, %v1095_v49 }
  0x95   :  { %285 = vadd.xlane.f32.xlu0 %v263_v35  ;;  %v267_v35 = vmul.f32 %v1074_v41, %v1074_v41  ;;  %v1100_v41 = vld [vmem:[%s1652_s3 + $0x60] sm:$0xff] }
  0x96   :  { %1718 = vst [vmem:[#allocation33_spill] sm:$0xff] %v1100_v41  ;;  %v269_v33 = vmul.f32 %v1100_v41, %v1100_v41  ;;  %v272_v41 = vmul.f32 %v1111_v56, %v1111_v56 }
  0x97   :  { %v126_v46 = vpop.xlane.xlu2 %125  ;;  %v124_v45 = vpop.xlane.xlu1 %123 }
  0x98   :  { %v122_v15 = vpop.xlane.xlu0 %121 }
  0x9c   :  { %295 = vadd.xlane.f32.xlu2 %v268_v29  ;;  %293 = vadd.xlane.f32.xlu1 %v267_v35 }
  0x9d   :  { %291 = vadd.xlane.f32.xlu0 %v266_v62 }
  0x9f   :  { %v148_v34 = vpop.xlane.xlu2 %147  ;;  %v146_v32 = vpop.xlane.xlu1 %145 }
  0xa0   :  { %v178_v29 = vadd.f32 %v148_v34, %v100_v3  ;;  %v177_v35 = vadd.f32 %v146_v32, %v98_v52  ;;  %v128_v62 = vpop.xlane.xlu0 %127 }
  0xa4   :  { %301 = vadd.xlane.f32.xlu2 %v271_v48  ;;  %299 = vadd.xlane.f32.xlu1 %v270_v39 }
  0xa5   :  { %297 = vadd.xlane.f32.xlu0 %v269_v33 }
  0xa7   :  { %v154_v34 = vpop.xlane.xlu2 %153  ;;  %v152_v32 = vpop.xlane.xlu1 %151 }
  0xa8   :  { %v181_v52 = vadd.f32 %v154_v34, %v989_v47  ;;  %v1114_v3 = vadd.f32 %v152_v32, %v104_v63  ;;  %v150_v24 = vpop.xlane.xlu0 %149 }
  0xa9   :  { %v179_v49 = vadd.f32 %v150_v24, %v991_v51 }
  0xad   :  { %303 = vadd.xlane.f32.xlu0 %v272_v41 }
  0xaf   :  { %v160_v48 = vpop.xlane.xlu2 %159  ;;  %v158_v33 = vpop.xlane.xlu1 %157 }
  0xb0   :  { %v1119_v39 = vadd.f32 %v160_v48, %v112_v27  ;;  %v1121_v18 = vadd.f32 %v158_v33, %v110_v28  ;;  %v156_v54 = vpop.xlane.xlu0 %155 }
  0xb1   :  { %v182_v17 = vadd.f32 %v156_v54, %v1014_v61 }
  0xb7   :  { %v166_v43 = vpop.xlane.xlu2 %165  ;;  %v164_v47 = vpop.xlane.xlu1 %163 }
  0xb8   :  { %v1124_v63 = vadd.f32 %v166_v43, %v118_v4  ;;  %v186_v34 = vadd.f32 %v164_v47, %v116_v11  ;;  %v162_v32 = vpop.xlane.xlu0 %161 }
  0xb9   :  { %v1127_v24 = vadd.f32 %v162_v32, %v1037_v23 }
  0xbf   :  { %v172_v51 = vpop.xlane.xlu2 %171  ;;  %v170_v41 = vpop.xlane.xlu1 %169 }
  0xc0   :  { %v1129_v56 = vadd.f32 %v172_v51, %v124_v45  ;;  %v189_v27 = vadd.f32 %v170_v41, %v122_v15  ;;  %v168_v48 = vpop.xlane.xlu0 %167 }
  0xc1   :  { %v1131_v28 = vadd.f32 %v168_v48, %v120_v55 }
  0xc7   :  { %v210_v33 = vpop.xlane.xlu2 %209  ;;  %v176_v14 = vpop.xlane.xlu1 %175 }
  0xc8   :  { %v192_v61 = vadd.f32 %v176_v14, %v128_v62  ;;  %v174_v54 = vpop.xlane.xlu0 %173  ;;  %v241_v25 = vadd.f32 %v210_v33, %v177_v35 }
  0xc9   :  { %v1133_v53 = vadd.f32 %v174_v54, %v126_v46 }
  0xcf   :  { %v216_v43 = vpop.xlane.xlu2 %215  ;;  %v214_v4 = vpop.xlane.xlu1 %213 }
  0xd0   :  { %v212_v11 = vpop.xlane.xlu0 %211  ;;  %v243_v13 = vadd.f32 %v214_v4, %v179_v49  ;;  %v244_v49 = vadd.f32 %v216_v43, %v1114_v3 }
  0xd1   :  { %v242_v40 = vadd.f32 %v212_v11, %v178_v29 }
  0xd7   :  { %v222_v47 = vpop.xlane.xlu2 %221  ;;  %v220_v23 = vpop.xlane.xlu1 %219 }
  0xd8   :  { %v218_v32 = vpop.xlane.xlu0 %217 }
  0xdf   :  { %v228_v26 = vpop.xlane.xlu2 %227  ;;  %v226_v42 = vpop.xlane.xlu1 %225 }
  0xe0   :  { %v1135_v45 = vadd.f32 %v228_v26, %v186_v34  ;;  %v224_v15 = vpop.xlane.xlu0 %223 }
  0xe7   :  { %v234_v51 = vpop.xlane.xlu2 %233  ;;  %v1137_v55 = vpop.xlane.xlu1 %231 }
  0xe8   :  { %v1139_v41 = vadd.f32 %v234_v51, %v189_v27  ;;  %v1141_v14 = vpop.xlane.xlu0 %229 }
  0xea   :  { %1720 = vst [vmem:[#allocation35_spill] sm:$0xff] %v1139_v41 }
  0xef   :  { %v240_v46 = vpop.xlane.xlu2 %239  ;;  %v1143_v62 = vpop.xlane.xlu1 %237 }
  0xf0   :  { %v1145_v48 = vadd.f32 %v240_v46, %v192_v61  ;;  %v1147_v54 = vpop.xlane.xlu0 %235  ;;  %v246_v61 = vadd.f32 %v220_v23, %v182_v17  ;;  %v245_v46 = vadd.f32 %v218_v32, %v181_v52  ;;  %v249_v23 = vadd.f32 %v226_v42, %v1127_v24 }
  0xf7   :  { %v278_v26 = vpop.xlane.xlu2 %277  ;;  %v276_v34 = vpop.xlane.xlu1 %275 }
  0xf8   :  { %v307_v50 = vadd.f32 %v278_v26, %v243_v13  ;;  %v306_v12 = vadd.f32 %v276_v34, %v242_v40  ;;  %v274_v22 = vpop.xlane.xlu0 %273  ;;  %v248_v26 = vadd.f32 %v224_v15, %v1119_v39 }
  0xf9   :  { %v305_v5 = vadd.f32 %v274_v22, %v241_v25 }
  0xfa   :  { %v323_v27 = vmax.f32 %v307_v50, 1e-24  ;;  %v1149_v51 = vmax.f32 %v306_v12, 1e-24 }
  0xfb   :  { %v1151_v41 = vmax.f32 %v305_v5, 1e-24 }
  0xfc   :  { %629 = vrsqrt.f32 %v323_v27  ;;  %vm363_vm0 = vweird.f32 %v323_v27  ;;  %vm353_vm2 = vweird.f32 %v1149_v51 }
  0xfd   :  { %631 = vrsqrt.f32 %v1149_v51  ;;  %vm343_vm3 = vweird.f32 %v1151_v41 }
  0xfe   :  { %633 = vrsqrt.f32 %v1151_v41 }
  0xff   :  { %v284_v29 = vpop.xlane.xlu2 %283  ;;  %v282_v35 = vpop.xlane.xlu1 %281 }
 0x100   :  { %v310_v13 = vadd.f32 %v284_v29, %v246_v61  ;;  %v309_v40 = vadd.f32 %v282_v35, %v245_v46  ;;  %v280_v33 = vpop.xlane.xlu0 %279  ;;  %v247_v29 = vadd.f32 %v222_v47, %v1121_v18 }
 0x101   :  { %v308_v25 = vadd.f32 %v280_v33, %v244_v49 }
 0x102   :  { %v630_v50 = vpop.eup %629  ;;  %v1156_v12 = vmax.f32 %v310_v13, 1e-24  ;;  %v1158_v5 = vmax.f32 %v309_v40, 1e-24 }
 0x103   :  { %v632_v22 = vpop.eup %631  ;;  %v358_v4 = vmul.f32 %v630_v50, %v323_v27  ;;  %v1160_v11 = vmax.f32 %v308_v25, 1e-24  ;;  %vm364_vm1 = vweird.f32 %v630_v50 }
 0x104   :  { %v1162_v17 = vpop.eup %633  ;;  %v348_v52 = vmul.f32 %v632_v22, %v1149_v51  ;;  %635 = vrsqrt.f32 %v1156_v12  ;;  %vm354_vm4 = vweird.f32 %v632_v22  ;;  %vm365_vm5 = vmor %vm363_vm0, %vm364_vm1  ;;  %vm393_vm9 = vweird.f32 %v1156_v12 }
 0x105   :  { %v359_v3 = vmul.f32 %v630_v50, %v358_v4  ;;  %v338_v43 = vmul.f32 %v1162_v17, %v1151_v41  ;;  %637 = vrsqrt.f32 %v1158_v5  ;;  %vm344_vm6 = vweird.f32 %v1162_v17  ;;  %vm355_vm7 = vmor %vm353_vm2, %vm354_vm4 }
 0x106   :  { %v349_v32 = vmul.f32 %v632_v22, %v348_v52  ;;  %639 = vrsqrt.f32 %v1160_v11  ;;  %vm345_vm8 = vmor %vm343_vm3, %vm344_vm6  ;;  %vm383_vm13 = vweird.f32 %v1158_v5  ;;  %vm373_vm0 = vweird.f32 %v1160_v11 }
 0x107   :  { %v360_v34 = vmul.f32 0.5, %v359_v3  ;;  %v339_v61 = vmul.f32 %v1162_v17, %v338_v43  ;;  %v290_v46 = vpop.xlane.xlu2 %289  ;;  %v288_v49 = vpop.xlane.xlu1 %287 }
 0x108   :  { %v350_v35 = vmul.f32 0.5, %v349_v32  ;;  %v313_v13 = vadd.f32 %v290_v46, %v249_v23  ;;  %v286_v40 = vpop.xlane.xlu0 %285  ;;  %v312_v42 = vadd.f32 %v288_v49, %v248_v26 }
 0x109   :  { %v361_v33 = vsub.f32 1.5, %v360_v34  ;;  %v340_v25 = vmul.f32 0.5, %v339_v61 }
 0x10a   :  { %v1174_v24 = vpop.eup %635  ;;  %v351_v4 = vsub.f32 1.5, %v350_v35  ;;  %v1178_v39 = vmax.f32 %v313_v13, 1e-24  ;;  %v1193_v61 = vmax.f32 %v312_v42, 1e-24 }
 0x10b   :  { %v1180_v15 = vpop.eup %637  ;;  %v362_v18 = vmul.f32 %v630_v50, %v361_v33  ;;  %v341_v47 = vsub.f32 1.5, %v340_v25  ;;  %v388_v52 = vmul.f32 %v1174_v24, %v1156_v12  ;;  %vm394_vm10 = vweird.f32 %v1174_v24 }
 0x10c   :  { %v1184_v3 = vpop.eup %639  ;;  %v352_v43 = vmul.f32 %v632_v22, %v351_v4  ;;  %v378_v23 = vmul.f32 %v1180_v15, %v1158_v5  ;;  %641 = vrsqrt.f32 %v1178_v39  ;;  %vm384_vm11 = vweird.f32 %v1180_v15  ;;  %vm395_vm12 = vmor %vm393_vm9, %vm394_vm10 }
 0x10d   :  { %v366_v32 = vsel %vm365_vm5, %v630_v50, %v362_v18  ;;  %v342_v26 = vmul.f32 %v1162_v17, %v341_v47  ;;  %v389_v34 = vmul.f32 %v1174_v24, %v388_v52  ;;  %v368_v35 = vmul.f32 %v1184_v3, %v1160_v11  ;;  %vm385_vm14 = vmor %vm383_vm13, %vm384_vm11 }
 0x10e   :  { %v499_v46 = vmul.f32 %v366_v32, %v703_v1  ;;  %v531_v27 = vmul.f32 %v366_v32, %v810_v38  ;;  %v563_v49 = vmul.f32 %v366_v32, %v898_v9  ;;  %v595_v50 = vmul.f32 %v366_v32, %v1002_v57 }
 0x10f   :  { %v356_v13 = vsel %vm355_vm7, %v632_v22, %v352_v43  ;;  %v390_v33 = vmul.f32 0.5, %v389_v34  ;;  %v379_v25 = vmul.f32 %v1180_v15, %v378_v23  ;;  %v252_v1 = vadd.f32 %v1137_v55, %v1131_v28  ;;  %v296_v57 = vpop.xlane.xlu2 %295  ;;  %v294_v55 = vpop.xlane.xlu1 %293 }
 0x110   :  { %v251_v38 = vadd.f32 %v1141_v14, %v1124_v63  ;;  %515 = vst [vmem:[%s1653_s4 + $0x40] sm:$0xff] %v499_v46  ;;  %v498_v9 = vmul.f32 %v356_v13, %v729_v8  ;;  %v292_v51 = vpop.xlane.xlu0 %291  ;;  %v530_v63 = vmul.f32 %v356_v13, %v783_v30  ;;  %v346_v28 = vsel %vm345_vm8, %v1162_v17, %v342_v26 }
 0x111   :  { %547 = vst [vmem:[%s1653_s4 + $0x48] sm:$0xff] %v531_v27  ;;  %v311_v8 = vadd.f32 %v286_v40, %v247_v29  ;;  %v562_v41 = vmul.f32 %v356_v13, %v903_v10  ;;  %v391_v22 = vsub.f32 1.5, %v390_v33  ;;  %v380_v42 = vmul.f32 0.5, %v379_v25 }
 0x112   :  { %v1224_v14 = vpop.eup %641  ;;  %579 = vst [vmem:[%s1653_s4 + $0x50] sm:$0xff] %v563_v49  ;;  %v369_v4 = vmul.f32 %v1184_v3, %v368_v35  ;;  %v594_v30 = vmul.f32 %v356_v13, %v1007_v58  ;;  %643 = vrsqrt.f32 %v1193_v61  ;;  %v497_v10 = vmul.f32 %v346_v28, %v708_v2 }
 0x113   :  { %611 = vst [vmem:[%s1653_s4 + $0x58] sm:$0xff] %v595_v50  ;;  %v418_v17 = vmul.f32 %v1224_v14, %v1178_v39  ;;  %v392_v29 = vmul.f32 %v1174_v24, %v391_v22  ;;  %v381_v40 = vsub.f32 1.5, %v380_v42  ;;  %v529_v58 = vmul.f32 %v346_v28, %v788_v31  ;;  %v1723_v42 = vld [vmem:[#allocation35_spill] sm:$0xff] }
 0x114   :  { %514 = vst [vmem:[%s1653_s4 + $0x20] sm:$0xff] %v498_v9  ;;  %v370_v18 = vmul.f32 0.5, %v369_v4  ;;  %v1254_v2 = vmax.f32 %v311_v8, 1e-24  ;;  %v561_v52 = vmul.f32 %v346_v28, %v876_v60  ;;  %v593_v12 = vmul.f32 %v346_v28, %v1012_v59 }
 0x115   :  { %546 = vst [vmem:[%s1653_s4 + $0x28] sm:$0xff] %v530_v63  ;;  %v419_v47 = vmul.f32 %v1224_v14, %v418_v17  ;;  %v396_v43 = vsel %vm395_vm12, %v1174_v24, %v392_v29  ;;  %v382_v31 = vmul.f32 %v1180_v15, %v381_v40  ;;  %vm374_vm15 = vweird.f32 %v1184_v3  ;;  %v1721_v63 = vld [vmem:[#allocation13_spill] sm:$0xff]  ;;  %v1724_v17 = vld [vmem:[#allocation2_spill] sm:$0xff] }
 0x116   :  { %578 = vst [vmem:[%s1653_s4 + $0x30] sm:$0xff] %v562_v41  ;;  %v371_v23 = vsub.f32 1.5, %v370_v18  ;;  %v502_v5 = vmul.f32 %v396_v43, %v719_v6  ;;  %v316_v32 = vadd.f32 %v296_v57, %v252_v1  ;;  %645 = vrsqrt.f32 %v1254_v2  ;;  %vm375_vm1 = vmor %vm373_vm0, %vm374_vm15 }
 0x117   :  { %610 = vst [vmem:[%s1653_s4 + $0x38] sm:$0xff] %v594_v30  ;;  %v386_v60 = vsel %vm385_vm14, %v1180_v15, %v382_v31  ;;  %v420_v26 = vmul.f32 0.5, %v419_v47  ;;  %v255_v6 = vadd.f32 %v1143_v62, %v1133_v53  ;;  %v534_v46 = vmul.f32 %v396_v43, %v831_v44  ;;  %v302_v62 = vpop.xlane.xlu2 %301 }
 0x118   :  { %513 = vst [vmem:[%s1653_s4] sm:$0xff] %v497_v10  ;;  %v372_v24 = vmul.f32 %v1184_v3, %v371_v23  ;;  %v298_v59 = vpop.xlane.xlu0 %297  ;;  %v1276_v34 = vpop.eup %643  ;;  %v315_v27 = vadd.f32 %v294_v55, %v251_v38  ;;  %v314_v15 = vadd.f32 %v292_v51, %v1135_v45  ;;  %v566_v49 = vmul.f32 %v396_v43, %v919_v19 }
 0x119   :  { %545 = vst [vmem:[%s1653_s4 + $0x8] sm:$0xff] %v529_v58  ;;  %v421_v35 = vsub.f32 1.5, %v420_v26  ;;  %v408_v53 = vmul.f32 %v1276_v34, %v1193_v61  ;;  %v254_v50 = vadd.f32 %v1147_v54, %v1129_v56  ;;  %v598_v44 = vmul.f32 %v396_v43, %v1025_v16  ;;  %v300_v19 = vpop.xlane.xlu1 %299 }
 0x11a   :  { %577 = vst [vmem:[%s1653_s4 + $0x10] sm:$0xff] %v561_v52  ;;  %v501_v45 = vmul.f32 %v386_v60, %v698_v0  ;;  %vm424_vm2 = vweird.f32 %v1224_v14  ;;  %v533_v56 = vmul.f32 %v386_v60, %v800_v36  ;;  %v376_v54 = vsel %vm375_vm1, %v1184_v3, %v372_v24  ;;  %v1726_v52 = vld [vmem:[#allocation16_spill] sm:$0xff] }
 0x11b   :  { %609 = vst [vmem:[%s1653_s4 + $0x18] sm:$0xff] %v593_v12  ;;  %v409_v11 = vmul.f32 %v1276_v34, %v408_v53  ;;  %v1308_v13 = vmax.f32 %v316_v32, 1e-24  ;;  %v422_v0 = vmul.f32 %v1224_v14, %v421_v35  ;;  %v1314_v16 = vmax.f32 %v315_v27, 1e-24  ;;  %v1728_v32 = vld [vmem:[#allocation3_spill] sm:$0xff] }
 0x11c   :  { %518 = vst [vmem:[%s1653_s4 + $0xa0] sm:$0xff] %v502_v5  ;;  %v1316_v33 = vmax.f32 %v314_v15, 1e-24  ;;  %v319_v25 = vadd.f32 %v302_v62, %v255_v6  ;;  %v1318_v1 = vpop.eup %645  ;;  %v565_v36 = vmul.f32 %v386_v60, %v924_v20  ;;  %v318_v38 = vadd.f32 %v300_v19, %v254_v50  ;;  %v1731_v53 = vld [vmem:[#allocation26_spill] sm:$0xff] }
 0x11d   :  { %550 = vst [vmem:[%s1653_s4 + $0xa8] sm:$0xff] %v534_v46  ;;  %v410_v3 = vmul.f32 0.5, %v409_v11  ;;  %647 = vrsqrt.f32 %v1308_v13  ;;  %v597_v9 = vmul.f32 %v386_v60, %v1030_v21  ;;  %vm423_vm3 = vweird.f32 %v1178_v39 }
 0x11e   :  { %582 = vst [vmem:[%s1653_s4 + $0xb0] sm:$0xff] %v566_v49  ;;  %vm413_vm4 = vweird.f32 %v1193_v61  ;;  %vm414_vm5 = vweird.f32 %v1276_v34  ;;  %v500_v20 = vmul.f32 %v376_v54, %v724_v7  ;;  %vm425_vm6 = vmor %vm423_vm3, %vm424_vm2  ;;  %v398_v51 = vmul.f32 %v1318_v1, %v1254_v2  ;;  %v1725_v61 = vld [vmem:[#allocation10_spill] sm:$0xff]  ;;  %v1730_v49 = vld [vmem:[#allocation17_spill] sm:$0xff] }
 0x11f   :  { %614 = vst [vmem:[%s1653_s4 + $0xb8] sm:$0xff] %v598_v44  ;;  %v411_v57 = vsub.f32 1.5, %v410_v3  ;;  %649 = vrsqrt.f32 %v1314_v16  ;;  %v532_v21 = vmul.f32 %v376_v54, %v805_v37  ;;  %v426_v39 = vsel %vm425_vm6, %v1224_v14, %v422_v0  ;;  %v1722_v37 = vld [vmem:[#allocation24_spill] sm:$0xff]  ;;  %vm415_vm7 = vmor %vm413_vm4, %vm414_vm5 }
 0x120   :  { %517 = vst [vmem:[%s1653_s4 + $0x80] sm:$0xff] %v501_v45  ;;  %651 = vrsqrt.f32 %v1316_v33  ;;  %v1347_v7 = vmax.f32 %v319_v25, 1e-24  ;;  %v564_v28 = vmul.f32 %v376_v54, %v1721_v63  ;;  %v399_v55 = vmul.f32 %v1318_v1, %v398_v51  ;;  %v304_v22 = vpop.xlane.xlu0 %303 }
 0x121   :  { %549 = vst [vmem:[%s1653_s4 + $0x88] sm:$0xff] %v533_v56  ;;  %v412_v8 = vmul.f32 %v1276_v34, %v411_v57  ;;  %v1355_v41 = vmax.f32 %v318_v38, 1e-24  ;;  %v596_v14 = vmul.f32 %v376_v54, %v1722_v37  ;;  %v317_v4 = vadd.f32 %v298_v59, %v1723_v42  ;;  %v1729_v59 = vld [vmem:[#allocation6_spill] sm:$0xff]  ;;  %v1733_v38 = vld [vmem:[#allocation7_spill] sm:$0xff] }
 0x122   :  { %581 = vst [vmem:[%s1653_s4 + $0x90] sm:$0xff] %v565_v36  ;;  %653 = vrsqrt.f32 %v1347_v7  ;;  %v505_v10 = vmul.f32 %v426_v39, %v1724_v17  ;;  %v400_v40 = vmul.f32 0.5, %v399_v55  ;;  %v537_v18 = vmul.f32 %v426_v39, %v1725_v61  ;;  %v1737_v17 = vld [vmem:[#allocation11_spill] sm:$0xff] }
 0x123   :  { %613 = vst [vmem:[%s1653_s4 + $0x98] sm:$0xff] %v597_v9  ;;  %v1367_v30 = vpop.eup %647  ;;  %v416_v29 = vsel %vm415_vm7, %v1276_v34, %v412_v8  ;;  %655 = vrsqrt.f32 %v1355_v41  ;;  %vm403_vm8 = vweird.f32 %v1254_v2  ;;  %v320_v58 = vadd.f32 %v304_v22, %v1145_v48  ;;  %v1727_v48 = vld [vmem:[#allocation25_spill] sm:$0xff]  ;;  %v1732_v2 = vld [vmem:[#allocation4_spill] sm:$0xff]  ;;  %v1735_v8 = vld [vmem:[#allocation27_spill] sm:$0xff] }
 0x124   :  { %516 = vst [vmem:[%s1653_s4 + $0x60] sm:$0xff] %v500_v20  ;;  %v569_v43 = vmul.f32 %v426_v39, %v1726_v52  ;;  %v401_v31 = vsub.f32 1.5, %v400_v40  ;;  %vm404_vm9 = vweird.f32 %v1318_v1  ;;  %v448_v23 = vmul.f32 %v1367_v30, %v1308_v13  ;;  %v1734_v20 = vld [vmem:[#allocation14_spill] sm:$0xff]  ;;  %v1739_v52 = vld [vmem:[#allocation28_spill] sm:$0xff] }
 0x125   :  { %548 = vst [vmem:[%s1653_s4 + $0x68] sm:$0xff] %v532_v21  ;;  %v1381_v47 = vpop.eup %649  ;;  %vm453_vm10 = vweird.f32 %v1308_v13  ;;  %v601_v5 = vmul.f32 %v426_v39, %v1727_v48  ;;  %v504_v60 = vmul.f32 %v416_v29, %v1728_v32  ;;  %v1400_v26 = vmax.f32 %v317_v4, 1e-24  ;;  %vm405_vm11 = vmor %vm403_vm8, %vm404_vm9  ;;  %v1736_v13 = vld [vmem:[#allocation5_spill] sm:$0xff] }
 0x126   :  { %580 = vst [vmem:[%s1653_s4 + $0x70] sm:$0xff] %v564_v28  ;;  %v1391_v12 = vpop.eup %651  ;;  %v438_v24 = vmul.f32 %v1381_v47, %v1314_v16  ;;  %v536_v34 = vmul.f32 %v416_v29, %v1729_v59  ;;  %v402_v6 = vmul.f32 %v1318_v1, %v401_v31  ;;  %v449_v46 = vmul.f32 %v1367_v30, %v448_v23  ;;  %v1740_v23 = vld [vmem:[#allocation8_spill] sm:$0xff]  ;;  %v1742_v59 = vld [vmem:[#allocation29_spill] sm:$0xff] }
 0x127   :  { %612 = vst [vmem:[%s1653_s4 + $0x78] sm:$0xff] %v596_v14  ;;  %v428_v27 = vmul.f32 %v1391_v12, %v1316_v33  ;;  %v568_v35 = vmul.f32 %v416_v29, %v1730_v49  ;;  %v600_v62 = vmul.f32 %v416_v29, %v1731_v53  ;;  %v1422_v44 = vmax.f32 %v320_v58, 1e-24  ;;  %v1738_v29 = vld [vmem:[#allocation19_spill] sm:$0xff] }
 0x128   :  { %521 = vst [vmem:[%s1653_s4 + $0x100] sm:$0xff] %v505_v10  ;;  %v1410_v15 = vpop.eup %653  ;;  %v439_v50 = vmul.f32 %v1381_v47, %v438_v24  ;;  %v406_v19 = vsel %vm405_vm11, %v1318_v1, %v402_v6  ;;  %v450_v56 = vmul.f32 0.5, %v449_v46  ;;  %vm454_vm12 = vweird.f32 %v1367_v30  ;;  %v1741_v24 = vld [vmem:[#allocation20_spill] sm:$0xff] }
 0x129   :  { %553 = vst [vmem:[%s1653_s4 + $0x108] sm:$0xff] %v537_v18  ;;  %v1424_v45 = vpop.eup %655  ;;  %v429_v54 = vmul.f32 %v1391_v12, %v428_v27  ;;  %v478_v11 = vmul.f32 %v1410_v15, %v1347_v7  ;;  %v503_v0 = vmul.f32 %v406_v19, %v1732_v2  ;;  %vm444_vm13 = vweird.f32 %v1381_v47  ;;  %vm455_vm14 = vmor %vm453_vm10, %vm454_vm12  ;;  %v662_v27 = vld [vmem:[%s1649_s0 + $0x48] sm:$0xff] }
 0x12a   :  { %585 = vst [vmem:[%s1653_s4 + $0x110] sm:$0xff] %v569_v43  ;;  %657 = vrsqrt.f32 %v1400_v26  ;;  %v451_v25 = vsub.f32 1.5, %v450_v56  ;;  %v440_v1 = vmul.f32 0.5, %v439_v50  ;;  %v535_v9 = vmul.f32 %v406_v19, %v1733_v38  ;;  %v1744_v56 = vld [vmem:[#allocation15_spill] sm:$0xff] }
 0x12b   :  { %617 = vst [vmem:[%s1653_s4 + $0x118] sm:$0xff] %v601_v5  ;;  %v430_v36 = vmul.f32 0.5, %v429_v54  ;;  %v479_v3 = vmul.f32 %v1410_v15, %v478_v11  ;;  %v567_v57 = vmul.f32 %v406_v19, %v1734_v20  ;;  %v468_v51 = vmul.f32 %v1424_v45, %v1355_v41  ;;  %v1745_v11 = vld [vmem:[#allocation30_spill] sm:$0xff] }
 0x12c   :  { %520 = vst [vmem:[%s1653_s4 + $0xe0] sm:$0xff] %v504_v60  ;;  %659 = vrsqrt.f32 %v1422_v44  ;;  %v452_v21 = vmul.f32 %v1367_v30, %v451_v25  ;;  %v441_v39 = vsub.f32 1.5, %v440_v1  ;;  %v599_v55 = vmul.f32 %v406_v19, %v1735_v8  ;;  %v663_v25 = vld [vmem:[%s1649_s0 + $0x70] sm:$0xff]  ;;  %v1747_v20 = vld [vmem:[#allocation22_spill] sm:$0xff] }
 0x12d   :  { %552 = vst [vmem:[%s1653_s4 + $0xe8] sm:$0xff] %v536_v34  ;;  %v431_v63 = vsub.f32 1.5, %v430_v36  ;;  %v480_v28 = vmul.f32 0.5, %v479_v3  ;;  %vm443_vm15 = vweird.f32 %v1314_v16  ;;  %v469_v22 = vmul.f32 %v1424_v45, %v468_v51  ;;  %v1748_v51 = vld [vmem:[#allocation31_spill] sm:$0xff] }
 0x12e   :  { %584 = vst [vmem:[%s1653_s4 + $0xf0] sm:$0xff] %v568_v35  ;;  %v456_v37 = vsel %vm455_vm14, %v1367_v30, %v452_v21  ;;  %v442_v14 = vmul.f32 %v1381_v47, %v441_v39  ;;  %vm434_vm0 = vweird.f32 %v1391_v12  ;;  %vm445_vm1 = vmor %vm443_vm15, %vm444_vm13  ;;  %vm433_vm2 = vweird.f32 %v1316_v33  ;;  %v661_v33 = vld [vmem:[%s1649_s0 + $0x50] sm:$0xff]  ;;  %v1743_v35 = vld [vmem:[#allocation9_spill] sm:$0xff] }
 0x12f   :  { %616 = vst [vmem:[%s1653_s4 + $0xf8] sm:$0xff] %v600_v62  ;;  %v432_v42 = vmul.f32 %v1391_v12, %v431_v63  ;;  %v508_v16 = vmul.f32 %v456_v37, %v1736_v13  ;;  %v540_v10 = vmul.f32 %v456_v37, %v1737_v17  ;;  %v481_v30 = vsub.f32 1.5, %v480_v28  ;;  %vm435_vm3 = vmor %vm433_vm2, %vm434_vm0  ;;  %v665_v63 = vld [vmem:[%s1650_s1 + $0x68] sm:$0xff]  ;;  %v667_v13 = vld [vmem:[%s1650_s1 + $0x60] sm:$0xff] }
 0x130   :  { %519 = vst [vmem:[%s1653_s4 + $0xc0] sm:$0xff] %v503_v0  ;;  %v1473_v4 = vpop.eup %657  ;;  %v572_v40 = vmul.f32 %v456_v37, %v1738_v29  ;;  %v446_v61 = vsel %vm445_vm1, %v1381_v47, %v442_v14  ;;  %v470_v18 = vmul.f32 0.5, %v469_v22  ;;  %v604_v43 = vmul.f32 %v456_v37, %v1739_v52  ;;  %v1750_v37 = vld [vmem:[#allocation32_spill] sm:$0xff]  ;;  %v1751_v17 = vld [vmem:[#allocation18_spill] sm:$0xff]  ;;  %v1753_v52 = vld [vmem:[#allocation21_spill] sm:$0xff] }
 0x131   :  { %551 = vst [vmem:[%s1653_s4 + $0xc8] sm:$0xff] %v535_v9  ;;  %v507_v47 = vmul.f32 %v661_v33, %v446_v61  ;;  %v436_v31 = vsel %vm435_vm3, %v1391_v12, %v432_v42  ;;  %vm484_vm4 = vweird.f32 %v1410_v15  ;;  %v539_v48 = vmul.f32 %v446_v61, %v1740_v23  ;;  %v666_v42 = vld [vmem:[%s1649_s0 + $0x60] sm:$0xff] }
 0x132   :  { %583 = vst [vmem:[%s1653_s4 + $0xd0] sm:$0xff] %v567_v57  ;;  %v1488_v58 = vpop.eup %659  ;;  %v482_v5 = vmul.f32 %v1410_v15, %v481_v30  ;;  %v471_v32 = vsub.f32 1.5, %v470_v18  ;;  %v458_v60 = vmul.f32 %v1473_v4, %v1400_v26  ;;  %v571_v12 = vmul.f32 %v446_v61, %v1741_v24  ;;  %v1752_v30 = vld [vmem:[#allocation33_spill] sm:$0xff]  ;;  %v1754_v33 = vld [vmem:[#allocation34_spill] sm:$0xff] }
 0x133   :  { %615 = vst [vmem:[%s1653_s4 + $0xd8] sm:$0xff] %v599_v55  ;;  %v603_v34 = vmul.f32 %v446_v61, %v1742_v59  ;;  %vm483_vm5 = vweird.f32 %v1347_v7  ;;  %v488_v46 = vmul.f32 %v1488_v58, %v1422_v44  ;;  %v506_v49 = vmul.f32 %v662_v27, %v436_v31  ;;  %v1749_v55 = vld [vmem:[#allocation23_spill] sm:$0xff]  ;;  %v669_v18 = vld [vmem:[%s1650_s1 + $0x78] sm:$0xff] }
 0x134   :  { %524 = vst [vmem:[%s1653_s4 + $0x160] sm:$0xff] %v508_v16  ;;  %v459_v6 = vmul.f32 %v1473_v4, %v458_v60  ;;  %v538_v53 = vmul.f32 %v436_v31, %v1743_v35  ;;  %vm485_vm6 = vmor %vm483_vm5, %vm484_vm4  ;;  %vm474_vm7 = vweird.f32 %v1424_v45  ;;  %v472_v62 = vmul.f32 %v1424_v45, %v471_v32 }
 0x135   :  { %556 = vst [vmem:[%s1653_s4 + $0x168] sm:$0xff] %v540_v10  ;;  %v486_v7 = vsel %vm485_vm6, %v1410_v15, %v482_v5  ;;  %v489_v19 = vmul.f32 %v1488_v58, %v488_v46  ;;  %v570_v54 = vmul.f32 %v436_v31, %v1744_v56  ;;  %v602_v2 = vmul.f32 %v436_v31, %v1745_v11 }
 0x136   :  { %588 = vst [vmem:[%s1653_s4 + $0x170] sm:$0xff] %v572_v40  ;;  %v460_v50 = vmul.f32 0.5, %v459_v6  ;;  %vm473_vm8 = vweird.f32 %v1355_v41  ;;  %v511_v1 = vmul.f32 %v663_v25, %v486_v7  ;;  %vm464_vm10 = vweird.f32 %v1473_v4  ;;  %v1746_v41 = vld [vmem:[#allocation12_spill] sm:$0xff]  ;;  %v668_v40 = vld [vmem:[%s1649_s0 + $0x78] sm:$0xff] }
 0x137   :  { %620 = vst [vmem:[%s1653_s4 + $0x178] sm:$0xff] %v604_v43  ;;  %v490_v0 = vmul.f32 0.5, %v489_v19  ;;  %vm475_vm9 = vmor %vm473_vm8, %vm474_vm7  ;;  %v543_v36 = vmul.f32 %v486_v7, %v1746_v41  ;;  %v575_v57 = vmul.f32 %v486_v7, %v1747_v20  ;;  %v607_v21 = vmul.f32 %v486_v7, %v1748_v51 }
 0x138   :  { %523 = vst [vmem:[%s1653_s4 + $0x140] sm:$0xff] %v507_v47  ;;  %v461_v15 = vsub.f32 1.5, %v460_v50  ;;  %v476_v3 = vsel %vm475_vm9, %v1424_v45, %v472_v62  ;;  %vm463_vm11 = vweird.f32 %v1400_v26  ;;  %v664_v45 = vld [vmem:[%s1649_s0 + $0x68] sm:$0xff]  ;;  %vm494_vm13 = vweird.f32 %v1488_v58 }
 0x139   :  { %555 = vst [vmem:[%s1653_s4 + $0x148] sm:$0xff] %v539_v48  ;;  %v491_v9 = vsub.f32 1.5, %v490_v0  ;;  %v510_v39 = vmul.f32 %v664_v45, %v476_v3  ;;  %vm465_vm12 = vmor %vm463_vm11, %vm464_vm10  ;;  %v542_v28 = vmul.f32 %v665_v63, %v476_v3  ;;  %v574_v22 = vmul.f32 %v476_v3, %v1749_v55 }
 0x13a   :  { %587 = vst [vmem:[%s1653_s4 + $0x150] sm:$0xff] %v571_v12  ;;  %v462_v38 = vmul.f32 %v1473_v4, %v461_v15  ;;  %v606_v14 = vmul.f32 %v476_v3, %v1750_v37  ;;  %vm493_vm14 = vweird.f32 %v1422_v44 }
 0x13b   :  { %619 = vst [vmem:[%s1653_s4 + $0x158] sm:$0xff] %v603_v34  ;;  %v492_v8 = vmul.f32 %v1488_v58, %v491_v9  ;;  %vm495_vm15 = vmor %vm493_vm14, %vm494_vm13 }
 0x13c   :  { %522 = vst [vmem:[%s1653_s4 + $0x120] sm:$0xff] %v506_v49  ;;  %v466_v26 = vsel %vm465_vm12, %v1473_v4, %v462_v38 }
 0x13d   :  { %554 = vst [vmem:[%s1653_s4 + $0x128] sm:$0xff] %v538_v53  ;;  %v509_v4 = vmul.f32 %v666_v42, %v466_v26  ;;  %v541_v16 = vmul.f32 %v667_v13, %v466_v26  ;;  %v496_v44 = vsel %vm495_vm15, %v1488_v58, %v492_v8  ;;  %v573_v10 = vmul.f32 %v466_v26, %v1751_v17 }
 0x13e   :  { %586 = vst [vmem:[%s1653_s4 + $0x130] sm:$0xff] %v570_v54  ;;  %v605_v29 = vmul.f32 %v466_v26, %v1752_v30  ;;  %v512_v61 = vmul.f32 %v668_v40, %v496_v44  ;;  %v544_v58 = vmul.f32 %v669_v18, %v496_v44  ;;  %v576_v43 = vmul.f32 %v496_v44, %v1753_v52 }
 0x13f   :  { %618 = vst [vmem:[%s1653_s4 + $0x138] sm:$0xff] %v602_v2  ;;  %v608_v47 = vmul.f32 %v496_v44, %v1754_v33 }
 0x140   :  { %527 = vst [vmem:[%s1653_s4 + $0x1c0] sm:$0xff] %v511_v1 }
 0x141   :  { %559 = vst [vmem:[%s1653_s4 + $0x1c8] sm:$0xff] %v543_v36 }
 0x142   :  { %591 = vst [vmem:[%s1653_s4 + $0x1d0] sm:$0xff] %v575_v57 }
 0x143   :  { %623 = vst [vmem:[%s1653_s4 + $0x1d8] sm:$0xff] %v607_v21 }
 0x144   :  { %526 = vst [vmem:[%s1653_s4 + $0x1a0] sm:$0xff] %v510_v39 }
 0x145   :  { %558 = vst [vmem:[%s1653_s4 + $0x1a8] sm:$0xff] %v542_v28 }
 0x146   :  { %590 = vst [vmem:[%s1653_s4 + $0x1b0] sm:$0xff] %v574_v22 }
 0x147   :  { %622 = vst [vmem:[%s1653_s4 + $0x1b8] sm:$0xff] %v606_v14 }
 0x148   :  { %525 = vst [vmem:[%s1653_s4 + $0x180] sm:$0xff] %v509_v4 }
 0x149   :  { %557 = vst [vmem:[%s1653_s4 + $0x188] sm:$0xff] %v541_v16 }
 0x14a   :  { %589 = vst [vmem:[%s1653_s4 + $0x190] sm:$0xff] %v573_v10 }
 0x14b   :  { %621 = vst [vmem:[%s1653_s4 + $0x198] sm:$0xff] %v605_v29 }
 0x14c   :  { %528 = vst [vmem:[%s1653_s4 + $0x1e0] sm:$0xff] %v512_v61 }
 0x14d   :  { %560 = vst [vmem:[%s1653_s4 + $0x1e8] sm:$0xff] %v544_v58 }
 0x14e   :  { %592 = vst [vmem:[%s1653_s4 + $0x1f0] sm:$0xff] %v576_v43 }
 0x14f   :  { %624 = vst [vmem:[%s1653_s4 + $0x1f8] sm:$0xff] %v608_v47 }

</bundles_post_ra>
